<compile_context>
chip_gen: v6e
topology: v6e:2x2x1
jax: 0.10.0
libtpu: 0.0.40
codegen_flags: <defaults>
</compile_context>

<pallas_src>
import jax
import jax.numpy as jnp
from jax import lax
from jax.experimental import pallas as pl
from jax.experimental.pallas import tpu as pltpu


# ------------------------------ small helpers ------------------------------ #

def _round_up(x, m):
    return (x + m - 1) // m * m


def _vmem_limit_bytes():
    """Generation-aware scoped-VMEM limit (v5e/v6e: 128 MiB phys, v7x: 64 MiB)."""
    try:
        cap = pltpu.get_tpu_info().vmem_capacity_bytes
    except Exception:
        cap = 64 * 1024 * 1024  # conservative fallback, safe on all generations
    return int(cap * 3 // 4)


def _pick_tile_m(m, k_pad, c_pad, vmem_budget_bytes):
    """Largest M-tile (multiple of 16, <= 512) whose pass-1 footprint fits.

    Per-tile footprint (double-buffered): bf16 patches (tm, k_pad) x2 +
    f32 conv output (tm, c_pad) x2, plus the resident bf16 weight x2.
    """
    per_row = 2 * (k_pad * 2) + 2 * (c_pad * 4)
    weight_bytes = 2 * (k_pad * c_pad * 2)
    avail = max(vmem_budget_bytes - weight_bytes, 64 * per_row)
    tm = int(avail // per_row)
    tm = max(16, min(512, (tm // 16) * 16))
    tm = min(tm, _round_up(m, 16))
    return tm


# ----------------------------- Pallas kernels ------------------------------ #

def _matmul_stats_kernel(p_ref, w_ref, y_ref, stats_ref):
    """Pass 1: conv-as-matmul + global BN statistics accumulation.

    p_ref:     (TM, K_pad)     bf16 im2col patches for this M tile
    w_ref:     (K_pad, C_pad)  bf16 conv weight (resident across the grid)
    y_ref:     (TM, C_pad)     f32 pre-BN conv output tile (streamed out)
    stats_ref: (2, C_pad)      f32 [sum; sum-of-squares] accumulator (resident)
    """
    i = pl.program_id(0)
    y = jnp.dot(p_ref[...], w_ref[...], preferred_element_type=jnp.float32)
    y_ref[...] = y

    @pl.when(i == 0)
    def _():
        stats_ref[...] = jnp.zeros_like(stats_ref)

    s = jnp.sum(y, axis=0, keepdims=True)
    sq = jnp.sum(y * y, axis=0, keepdims=True)
    stats_ref[...] = stats_ref[...] + jnp.concatenate([s, sq], axis=0)


def _bn_relu_kernel(y_ref, scale_ref, shift_ref, o_ref):
    """Pass 2: y * scale + shift -> ReLU (scale/shift fold gamma/beta/mean/var).

    All elementwise math in f32 (v5e-safe); single full-width bf16 store.
    """
    z = y_ref[...] * scale_ref[...] + shift_ref[...]
    o_ref[...] = jnp.maximum(z, 0.0).astype(o_ref.dtype)


def _matmul_bias_kernel(x_ref, w_ref, b_ref, o_ref):
    """Classifier 1x1 conv: x @ W + b with bf16 MXU operands, f32 output."""
    o_ref[...] = (
        jnp.dot(x_ref[...], w_ref[...], preferred_element_type=jnp.float32)
        + b_ref[...]
    )


# --------------------------- pallas_call wrappers --------------------------- #

def conv_stats(patches, w_mat, tm, vmem_limit):
    """Tiled matmul over M that also produces per-channel sum / sumsq."""
    m_pad, k_pad = patches.shape
    c_pad = w_mat.shape[1]
    grid = (m_pad // tm,)
    return pl.pallas_call(
        _matmul_stats_kernel,
        out_shape=(
            jax.ShapeDtypeStruct((m_pad, c_pad), jnp.float32),
            jax.ShapeDtypeStruct((2, c_pad), jnp.float32),
        ),
        grid=grid,
        in_specs=[
            pl.BlockSpec((tm, k_pad), lambda i: (i, 0)),      # streamed patches
            pl.BlockSpec((k_pad, c_pad), lambda i: (0, 0)),   # resident weight
        ],
        out_specs=(
            pl.BlockSpec((tm, c_pad), lambda i: (i, 0)),      # streamed conv out
            pl.BlockSpec((2, c_pad), lambda i: (0, 0)),       # resident stats acc
        ),
        compiler_params=pltpu.CompilerParams(
            # stats accumulate across the M axis -> must be "arbitrary"
            dimension_semantics=("arbitrary",),
            vmem_limit_bytes=vmem_limit,
        ),
    )(patches, w_mat)


def bn_relu(y, scale, shift, tm, vmem_limit):
    """Tiled normalize + affine + ReLU; M axis is fully parallel."""
    m_pad, c_pad = y.shape
    grid = (m_pad // tm,)
    return pl.pallas_call(
        _bn_relu_kernel,
        out_shape=jax.ShapeDtypeStruct((m_pad, c_pad), jnp.bfloat16),
        grid=grid,
        in_specs=[
            pl.BlockSpec((tm, c_pad), lambda i: (i, 0)),
            pl.BlockSpec((1, c_pad), lambda i: (0, 0)),       # resident scale
            pl.BlockSpec((1, c_pad), lambda i: (0, 0)),       # resident shift
        ],
        out_specs=pl.BlockSpec((tm, c_pad), lambda i: (i, 0)),
        compiler_params=pltpu.CompilerParams(
            dimension_semantics=("parallel",),                 # v7x dual-TC
            vmem_limit_bytes=vmem_limit,
        ),
    )(y, scale, shift)


def conv1x1(x_flat, w_mat, bias, vmem_limit):
    """Classifier 1x1 conv, tiled over M, lane-padded output, resident weight."""
    m, c = x_flat.shape
    num_classes = w_mat.shape[1]
    c_pad = _round_up(c, 128)
    nc_pad = _round_up(num_classes, 128)
    tm = _pick_tile_m(m, c_pad, nc_pad, int(vmem_limit * 0.6))
    m_pad = _round_up(m, tm)

    x_p = jnp.pad(x_flat.astype(jnp.bfloat16), ((0, m_pad - m), (0, c_pad - c)))
    w_p = jnp.pad(w_mat, ((0, c_pad - c), (0, nc_pad - num_classes)))
    w_p = w_p.astype(jnp.bfloat16)
    b_p = jnp.pad(bias, (0, nc_pad - num_classes))[None, :].astype(jnp.float32)

    out = pl.pallas_call(
        _matmul_bias_kernel,
        out_shape=jax.ShapeDtypeStruct((m_pad, nc_pad), jnp.float32),
        grid=(m_pad // tm,),
        in_specs=[
            pl.BlockSpec((tm, c_pad), lambda i: (i, 0)),
            pl.BlockSpec((c_pad, nc_pad), lambda i: (0, 0)),  # resident weight
            pl.BlockSpec((1, nc_pad), lambda i: (0, 0)),      # resident bias
        ],
        out_specs=pl.BlockSpec((tm, nc_pad), lambda i: (i, 0)),
        compiler_params=pltpu.CompilerParams(
            dimension_semantics=("parallel",),
            vmem_limit_bytes=vmem_limit,
        ),
    )(x_p, w_p, b_p)
    return out[:m, :num_classes]


# ------------------------------ JAX glue code ------------------------------ #

def im2col_3x3(x_nhwc):
    """3x3 pad=1 stride=1 patches -> (N*H*W, 9*C), ordered (dy, dx, c), bf16."""
    n, h, w, c = x_nhwc.shape
    xp = jnp.pad(x_nhwc, ((0, 0), (1, 1), (1, 1), (0, 0)))
    patches = [xp[:, dy:dy + h, dx:dx + w, :] for dy in range(3) for dx in range(3)]
    return jnp.concatenate(patches, axis=-1).reshape(n * h * w, 9 * c)


def apply_conv_module(x_nhwc, p, vmem_limit):
    """Conv2dModule: conv3x3 -> batchnorm (training-mode stats) -> relu."""
    n, h, w, cin = x_nhwc.shape
    cout = p["w"].shape[1]
    m = n * h * w
    k = 9 * cin
    k_pad = _round_up(k, 16)          # sublane alignment for the bf16 weight
    c_pad = _round_up(cout, 128)      # lane-dense output
    tm = _pick_tile_m(m, k_pad, c_pad, int(vmem_limit * 0.6))
    m_pad = _round_up(m, tm)

    # im2col in bf16 (halves HBM traffic vs f32); padded rows/cols are zeros so
    # they contribute nothing to the BN statistics.
    patches = im2col_3x3(x_nhwc.astype(jnp.bfloat16))
    patches = jnp.pad(patches, ((0, m_pad - m), (0, k_pad - k)))
    w_mat = jnp.pad(p["w"], ((0, k_pad - k), (0, c_pad - cout))).astype(jnp.bfloat16)

    # Pass 1: conv matmul + global per-channel sum / sumsq.
    y, stats = conv_stats(patches, w_mat, tm, vmem_limit)

    # Tiny per-channel glue math in f32 (divide by the TRUE pixel count m).
    mean = stats[0] / m
    var = jnp.maximum(stats[1] / m - mean * mean, 0.0)
    rstd = lax.rsqrt(var + 1e-5)
    gamma = jnp.pad(p["gamma"], (0, c_pad - cout))
    beta = jnp.pad(p["beta"], (0, c_pad - cout))
    scale = (gamma * rstd)[None, :].astype(jnp.float32)
    shift = (beta - mean * gamma * rstd)[None, :].astype(jnp.float32)

    # Pass 2: normalize + affine + ReLU (parallel over M tiles).
    out = bn_relu(y, scale, shift, tm, vmem_limit)
    return out[:m, :cout].reshape(n, h, w, cout)


def apply_unet_block(x_nhwc, p, vmem_limit):
    # upsample=False and no skip connection for every block in UNetEncoder.
    x = apply_conv_module(x_nhwc, p["conv1"], vmem_limit)
    x = apply_conv_module(x, p["conv2"], vmem_limit)
    return x


def unet_encoder_forward(x_nchw, params):
    vmem_limit = _vmem_limit_bytes()
    x = jnp.transpose(x_nchw, (0, 2, 3, 1))  # NCHW -> NHWC
    x = apply_unet_block(x, params["encoder1"], vmem_limit)
    x = apply_unet_block(x, params["encoder2"], vmem_limit)
    x = apply_unet_block(x, params["encoder3"], vmem_limit)
    x = apply_unet_block(x, params["encoder4"], vmem_limit)
    x = apply_unet_block(x, params["bottleneck"], vmem_limit)
    n, h, w, c = x.shape
    out = conv1x1(x.reshape(n * h * w, c), params["classifier"]["w"],
                  params["classifier"]["b"], vmem_limit)
    out = out.reshape(n, h, w, -1).astype(jnp.float32)
    return jnp.transpose(out, (0, 3, 1, 2))  # NHWC -> NCHW


# ------------------------------ initialization ------------------------------ #

def init_conv3x3(key, cin, cout):
    # Conv bias intentionally omitted: a per-channel bias added before
    # BatchNorm is exactly cancelled by the mean subtraction (wasted work).
    w = jax.random.normal(key, (3, 3, cin, cout), jnp.float32) * 0.05
    return {
        # (kh, kw, cin, cout) flattened to (9*cin, cout), matching the
        # (dy, dx, c) im2col ordering (PyTorch OIHW weight transposed).
        "w": w.reshape(9 * cin, cout),
        "gamma": jnp.ones((cout,), jnp.float32),
        "beta": jnp.zeros((cout,), jnp.float32),
    }


def init_unet_block(key, cin, cout):
    k1, k2 = jax.random.split(key)
    return {"conv1": init_conv3x3(k1, cin, cout),
            "conv2": init_conv3x3(k2, cout, cout)}


def init_unet_encoder(key, in_channels, num_classes, num_filters):
    ks = jax.random.split(key, 6)
    params = {
        "encoder1": init_unet_block(ks[0], in_channels, num_filters),
        "encoder2": init_unet_block(ks[1], num_filters, num_filters * 2),
        "encoder3": init_unet_block(ks[2], num_filters * 2, num_filters * 4),
        "encoder4": init_unet_block(ks[3], num_filters * 4, num_filters * 8),
        "bottleneck": init_unet_block(ks[4], num_filters * 8, num_filters * 16),
    }
    kw, kb = jax.random.split(ks[5])
    params["classifier"] = {
        "w": jax.random.normal(kw, (num_filters * 16, num_classes), jnp.float32) * 0.05,
        "b": jax.random.normal(kb, (num_classes,), jnp.float32) * 0.01,
    }
    return params


# ---------------------------------- main ----------------------------------- #

if __name__ == "__main__":
    key = jax.random.PRNGKey(0)
    k_x, k_p = jax.random.split(key)

    # Small shapes: batch=2, in_channels=3, num_classes=2, num_filters=4, spatial=8.
    N, CIN, H, W = 2, 3, 8, 8
    NUM_CLASSES, NUM_FILTERS = 2, 4

    x = jax.random.normal(k_x, (N, CIN, H, W), jnp.float32)
    params = init_unet_encoder(k_p, CIN, NUM_CLASSES, NUM_FILTERS)

    out = jax.jit(unet_encoder_forward)(x, params)
    out = jax.block_until_ready(out)

    assert out.shape == (N, NUM_CLASSES, H, W), out.shape
    assert out.dtype == jnp.float32
    print("KERNEL_OK")
</pallas_src>

<mosaic_0001>
module attributes {stable_mosaic.version = 11 : i64} {
  func.func @_matmul_stats_kernel(%arg0: i32, %arg1: memref<128x32xbf16, #tpu.memory_space<vmem>>, %arg2: memref<32x128xbf16, #tpu.memory_space<vmem>>, %arg3: memref<128x128xf32, #tpu.memory_space<vmem>>, %arg4: memref<2x128xf32, #tpu.memory_space<vmem>>) attributes {dimension_semantics = [#tpu.dimension_semantics<arbitrary>], iteration_bounds = array<i64: 1>, scalar_prefetch = 0 : i64, scratch_operands = 0 : i64, tpu.core_type = #tpu.core_type<tc>, window_params = [{transform_indices = @transform_0, window_bounds = array<i64: 128, 32>}, {pipeline_mode = #tpu.pipeline_mode<synchronous>, transform_indices = @transform_1, window_bounds = array<i64: 32, 128>}, {transform_indices = @transform_2, window_bounds = array<i64: 128, 128>}, {pipeline_mode = #tpu.pipeline_mode<synchronous>, transform_indices = @transform_3, window_bounds = array<i64: 2, 128>}]} {
    %c0 = arith.constant 0 : index
    %c0_0 = arith.constant 0 : index
    %0 = vector.load %arg1[%c0, %c0_0] : memref<128x32xbf16, #tpu.memory_space<vmem>>, vector<128x32xbf16>
    %c0_1 = arith.constant 0 : index
    %c0_2 = arith.constant 0 : index
    %1 = vector.load %arg2[%c0_1, %c0_2] : memref<32x128xbf16, #tpu.memory_space<vmem>>, vector<32x128xbf16>
    %cst = arith.constant dense<0.000000e+00> : vector<128x128xf32>
    %2 = tpu.matmul %0, %1, %cst {dimension_numbers = #tpu.dot_dimension_numbers<[1], [0], [0], [1], [0, 0, 1, 1], [], []>} : vector<128x32xbf16>, vector<32x128xbf16>, vector<128x128xf32> -> vector<128x128xf32>
    %c0_3 = arith.constant 0 : index
    %c0_4 = arith.constant 0 : index
    %3 = vector.load %arg3[%c0_3, %c0_4] : memref<128x128xf32, #tpu.memory_space<vmem>>, vector<128x128xf32>
    tpu.vector_store %arg3[%c0_3, %c0_4], %2 {strides = array<i32>} : memref<128x128xf32, #tpu.memory_space<vmem>>, vector<128x128xf32>,
    %c0_i32 = arith.constant 0 : i32
    %4 = arith.cmpi eq, %arg0, %c0_i32 : i32
    %5 = arith.extui %4 : i1 to i32
    %c0_i32_5 = arith.constant 0 : i32
    %6 = arith.cmpi ne, %5, %c0_i32_5 : i32
    scf.if %6 {
      %cst_12 = arith.constant 0.000000e+00 : f32
      %16 = vector.broadcast %cst_12 : f32 to vector<2x128xf32>
      %c0_13 = arith.constant 0 : index
      %c0_14 = arith.constant 0 : index
      %17 = vector.load %arg4[%c0_13, %c0_14] : memref<2x128xf32, #tpu.memory_space<vmem>>, vector<2x128xf32>
      tpu.vector_store %arg4[%c0_13, %c0_14], %16 {strides = array<i32>} : memref<2x128xf32, #tpu.memory_space<vmem>>, vector<2x128xf32>,
    } else {
    }
    %cst_6 = arith.constant dense<0.000000e+00> : vector<128xf32>
    %7 = vector.multi_reduction <add>, %2, %cst_6 [0] : vector<128x128xf32> to vector<128xf32>
    %8 = vector.shape_cast %7 : vector<128xf32> to vector<1x128xf32>
    %9 = arith.mulf %2, %2 : vector<128x128xf32>
    %cst_7 = arith.constant dense<0.000000e+00> : vector<128xf32>
    %10 = vector.multi_reduction <add>, %9, %cst_7 [0] : vector<128x128xf32> to vector<128xf32>
    %11 = vector.shape_cast %10 : vector<128xf32> to vector<1x128xf32>
    %c0_8 = arith.constant 0 : index
    %c0_9 = arith.constant 0 : index
    %12 = vector.load %arg4[%c0_8, %c0_9] : memref<2x128xf32, #tpu.memory_space<vmem>>, vector<2x128xf32>
    %13 = tpu.concatenate %8, %11 in 0 : vector<1x128xf32>, vector<1x128xf32> -> vector<2x128xf32>
    %14 = arith.addf %12, %13 : vector<2x128xf32>
    %c0_10 = arith.constant 0 : index
    %c0_11 = arith.constant 0 : index
    %15 = vector.load %arg4[%c0_10, %c0_11] : memref<2x128xf32, #tpu.memory_space<vmem>>, vector<2x128xf32>
    tpu.vector_store %arg4[%c0_10, %c0_11], %14 {strides = array<i32>} : memref<2x128xf32, #tpu.memory_space<vmem>>, vector<2x128xf32>,
    return
  }
  func.func @transform_0(%arg0: i32) -> (i32, i32) {
    %c0_i32 = arith.constant 0 : i32
    %c0_i32_0 = arith.constant 0 : i32
    return %arg0, %c0_i32 : i32, i32
  }
  func.func @transform_1(%arg0: i32) -> (i32, i32) {
    %c0_i32 = arith.constant 0 : i32
    %c0_i32_0 = arith.constant 0 : i32
    %c0_i32_1 = arith.constant 0 : i32
    return %c0_i32, %c0_i32_0 : i32, i32
  }
  func.func @transform_2(%arg0: i32) -> (i32, i32) {
    %c0_i32 = arith.constant 0 : i32
    %c0_i32_0 = arith.constant 0 : i32
    return %arg0, %c0_i32 : i32, i32
  }
  func.func @transform_3(%arg0: i32) -> (i32, i32) {
    %c0_i32 = arith.constant 0 : i32
    %c0_i32_0 = arith.constant 0 : i32
    %c0_i32_1 = arith.constant 0 : i32
    return %c0_i32, %c0_i32_0 : i32, i32
  }
}

module attributes {stable_mosaic.version = 11 : i64} {
  func.func @_bn_relu_kernel(%arg0: i32, %arg1: memref<128x128xf32, #tpu.memory_space<vmem>>, %arg2: memref<1x128xf32, #tpu.memory_space<vmem>>, %arg3: memref<1x128xf32, #tpu.memory_space<vmem>>, %arg4: memref<128x128xbf16, #tpu.memory_space<vmem>>) attributes {dimension_semantics = [#tpu.dimension_semantics<parallel>], iteration_bounds = array<i64: 1>, scalar_prefetch = 0 : i64, scratch_operands = 0 : i64, tpu.core_type = #tpu.core_type<tc>, window_params = [{transform_indices = @transform_0, window_bounds = array<i64: 128, 128>}, {pipeline_mode = #tpu.pipeline_mode<synchronous>, transform_indices = @transform_1, window_bounds = array<i64: 1, 128>}, {pipeline_mode = #tpu.pipeline_mode<synchronous>, transform_indices = @transform_2, window_bounds = array<i64: 1, 128>}, {transform_indices = @transform_3, window_bounds = array<i64: 128, 128>}]} {
    %c0 = arith.constant 0 : index
    %c0_0 = arith.constant 0 : index
    %0 = vector.load %arg1[%c0, %c0_0] : memref<128x128xf32, #tpu.memory_space<vmem>>, vector<128x128xf32>
    %c0_1 = arith.constant 0 : index
    %c0_2 = arith.constant 0 : index
    %1 = vector.load %arg2[%c0_1, %c0_2] : memref<1x128xf32, #tpu.memory_space<vmem>>, vector<1x128xf32>
    %2 = vector.broadcast %1 : vector<1x128xf32> to vector<128x128xf32>
    %3 = arith.mulf %0, %2 : vector<128x128xf32>
    %c0_3 = arith.constant 0 : index
    %c0_4 = arith.constant 0 : index
    %4 = vector.load %arg3[%c0_3, %c0_4] : memref<1x128xf32, #tpu.memory_space<vmem>>, vector<1x128xf32>
    %5 = vector.broadcast %4 : vector<1x128xf32> to vector<128x128xf32>
    %6 = arith.addf %3, %5 : vector<128x128xf32>
    %cst = arith.constant 0.000000e+00 : f32
    %7 = vector.broadcast %cst : f32 to vector<128x128xf32>
    %8 = arith.maximumf %6, %7 : vector<128x128xf32>
    %9 = arith.truncf %8 : vector<128x128xf32> to vector<128x128xbf16>
    %c0_5 = arith.constant 0 : index
    %c0_6 = arith.constant 0 : index
    %10 = vector.load %arg4[%c0_5, %c0_6] : memref<128x128xbf16, #tpu.memory_space<vmem>>, vector<128x128xbf16>
    tpu.vector_store %arg4[%c0_5, %c0_6], %9 {strides = array<i32>} : memref<128x128xbf16, #tpu.memory_space<vmem>>, vector<128x128xbf16>,
    return
  }
  func.func @transform_0(%arg0: i32) -> (i32, i32) {
    %c0_i32 = arith.constant 0 : i32
    %c0_i32_0 = arith.constant 0 : i32
    return %arg0, %c0_i32 : i32, i32
  }
  func.func @transform_1(%arg0: i32) -> (i32, i32) {
    %c0_i32 = arith.constant 0 : i32
    %c0_i32_0 = arith.constant 0 : i32
    %c0_i32_1 = arith.constant 0 : i32
    return %c0_i32, %c0_i32_0 : i32, i32
  }
  func.func @transform_2(%arg0: i32) -> (i32, i32) {
    %c0_i32 = arith.constant 0 : i32
    %c0_i32_0 = arith.constant 0 : i32
    %c0_i32_1 = arith.constant 0 : i32
    return %c0_i32, %c0_i32_0 : i32, i32
  }
  func.func @transform_3(%arg0: i32) -> (i32, i32) {
    %c0_i32 = arith.constant 0 : i32
    %c0_i32_0 = arith.constant 0 : i32
    return %arg0, %c0_i32 : i32, i32
  }
}

module attributes {stable_mosaic.version = 11 : i64} {
  func.func @_matmul_stats_kernel(%arg0: i32, %arg1: memref<128x48xbf16, #tpu.memory_space<vmem>>, %arg2: memref<48x128xbf16, #tpu.memory_space<vmem>>, %arg3: memref<128x128xf32, #tpu.memory_space<vmem>>, %arg4: memref<2x128xf32, #tpu.memory_space<vmem>>) attributes {dimension_semantics = [#tpu.dimension_semantics<arbitrary>], iteration_bounds = array<i64: 1>, scalar_prefetch = 0 : i64, scratch_operands = 0 : i64, tpu.core_type = #tpu.core_type<tc>, window_params = [{transform_indices = @transform_0, window_bounds = array<i64: 128, 48>}, {pipeline_mode = #tpu.pipeline_mode<synchronous>, transform_indices = @transform_1, window_bounds = array<i64: 48, 128>}, {transform_indices = @transform_2, window_bounds = array<i64: 128, 128>}, {pipeline_mode = #tpu.pipeline_mode<synchronous>, transform_indices = @transform_3, window_bounds = array<i64: 2, 128>}]} {
    %c0 = arith.constant 0 : index
    %c0_0 = arith.constant 0 : index
    %0 = vector.load %arg1[%c0, %c0_0] : memref<128x48xbf16, #tpu.memory_space<vmem>>, vector<128x48xbf16>
    %c0_1 = arith.constant 0 : index
    %c0_2 = arith.constant 0 : index
    %1 = vector.load %arg2[%c0_1, %c0_2] : memref<48x128xbf16, #tpu.memory_space<vmem>>, vector<48x128xbf16>
    %cst = arith.constant dense<0.000000e+00> : vector<128x128xf32>
    %2 = tpu.matmul %0, %1, %cst {dimension_numbers = #tpu.dot_dimension_numbers<[1], [0], [0], [1], [0, 0, 1, 1], [], []>} : vector<128x48xbf16>, vector<48x128xbf16>, vector<128x128xf32> -> vector<128x128xf32>
    %c0_3 = arith.constant 0 : index
    %c0_4 = arith.constant 0 : index
    %3 = vector.load %arg3[%c0_3, %c0_4] : memref<128x128xf32, #tpu.memory_space<vmem>>, vector<128x128xf32>
    tpu.vector_store %arg3[%c0_3, %c0_4], %2 {strides = array<i32>} : memref<128x128xf32, #tpu.memory_space<vmem>>, vector<128x128xf32>,
    %c0_i32 = arith.constant 0 : i32
    %4 = arith.cmpi eq, %arg0, %c0_i32 : i32
    %5 = arith.extui %4 : i1 to i32
    %c0_i32_5 = arith.constant 0 : i32
    %6 = arith.cmpi ne, %5, %c0_i32_5 : i32
    scf.if %6 {
      %cst_12 = arith.constant 0.000000e+00 : f32
      %16 = vector.broadcast %cst_12 : f32 to vector<2x128xf32>
      %c0_13 = arith.constant 0 : index
      %c0_14 = arith.constant 0 : index
      %17 = vector.load %arg4[%c0_13, %c0_14] : memref<2x128xf32, #tpu.memory_space<vmem>>, vector<2x128xf32>
      tpu.vector_store %arg4[%c0_13, %c0_14], %16 {strides = array<i32>} : memref<2x128xf32, #tpu.memory_space<vmem>>, vector<2x128xf32>,
    } else {
    }
    %cst_6 = arith.constant dense<0.000000e+00> : vector<128xf32>
    %7 = vector.multi_reduction <add>, %2, %cst_6 [0] : vector<128x128xf32> to vector<128xf32>
    %8 = vector.shape_cast %7 : vector<128xf32> to vector<1x128xf32>
    %9 = arith.mulf %2, %2 : vector<128x128xf32>
    %cst_7 = arith.constant dense<0.000000e+00> : vector<128xf32>
    %10 = vector.multi_reduction <add>, %9, %cst_7 [0] : vector<128x128xf32> to vector<128xf32>
    %11 = vector.shape_cast %10 : vector<128xf32> to vector<1x128xf32>
    %c0_8 = arith.constant 0 : index
    %c0_9 = arith.constant 0 : index
    %12 = vector.load %arg4[%c0_8, %c0_9] : memref<2x128xf32, #tpu.memory_space<vmem>>, vector<2x128xf32>
    %13 = tpu.concatenate %8, %11 in 0 : vector<1x128xf32>, vector<1x128xf32> -> vector<2x128xf32>
    %14 = arith.addf %12, %13 : vector<2x128xf32>
    %c0_10 = arith.constant 0 : index
    %c0_11 = arith.constant 0 : index
    %15 = vector.load %arg4[%c0_10, %c0_11] : memref<2x128xf32, #tpu.memory_space<vmem>>, vector<2x128xf32>
    tpu.vector_store %arg4[%c0_10, %c0_11], %14 {strides = array<i32>} : memref<2x128xf32, #tpu.memory_space<vmem>>, vector<2x128xf32>,
    return
  }
  func.func @transform_0(%arg0: i32) -> (i32, i32) {
    %c0_i32 = arith.constant 0 : i32
    %c0_i32_0 = arith.constant 0 : i32
    return %arg0, %c0_i32 : i32, i32
  }
  func.func @transform_1(%arg0: i32) -> (i32, i32) {
    %c0_i32 = arith.constant 0 : i32
    %c0_i32_0 = arith.constant 0 : i32
    %c0_i32_1 = arith.constant 0 : i32
    return %c0_i32, %c0_i32_0 : i32, i32
  }
  func.func @transform_2(%arg0: i32) -> (i32, i32) {
    %c0_i32 = arith.constant 0 : i32
    %c0_i32_0 = arith.constant 0 : i32
    return %arg0, %c0_i32 : i32, i32
  }
  func.func @transform_3(%arg0: i32) -> (i32, i32) {
    %c0_i32 = arith.constant 0 : i32
    %c0_i32_0 = arith.constant 0 : i32
    %c0_i32_1 = arith.constant 0 : i32
    return %c0_i32, %c0_i32_0 : i32, i32
  }
}

module attributes {stable_mosaic.version = 11 : i64} {
  func.func @_matmul_stats_kernel(%arg0: i32, %arg1: memref<128x80xbf16, #tpu.memory_space<vmem>>, %arg2: memref<80x128xbf16, #tpu.memory_space<vmem>>, %arg3: memref<128x128xf32, #tpu.memory_space<vmem>>, %arg4: memref<2x128xf32, #tpu.memory_space<vmem>>) attributes {dimension_semantics = [#tpu.dimension_semantics<arbitrary>], iteration_bounds = array<i64: 1>, scalar_prefetch = 0 : i64, scratch_operands = 0 : i64, tpu.core_type = #tpu.core_type<tc>, window_params = [{transform_indices = @transform_0, window_bounds = array<i64: 128, 80>}, {pipeline_mode = #tpu.pipeline_mode<synchronous>, transform_indices = @transform_1, window_bounds = array<i64: 80, 128>}, {transform_indices = @transform_2, window_bounds = array<i64: 128, 128>}, {pipeline_mode = #tpu.pipeline_mode<synchronous>, transform_indices = @transform_3, window_bounds = array<i64: 2, 128>}]} {
    %c0 = arith.constant 0 : index
    %c0_0 = arith.constant 0 : index
    %0 = vector.load %arg1[%c0, %c0_0] : memref<128x80xbf16, #tpu.memory_space<vmem>>, vector<128x80xbf16>
    %c0_1 = arith.constant 0 : index
    %c0_2 = arith.constant 0 : index
    %1 = vector.load %arg2[%c0_1, %c0_2] : memref<80x128xbf16, #tpu.memory_space<vmem>>, vector<80x128xbf16>
    %cst = arith.constant dense<0.000000e+00> : vector<128x128xf32>
    %2 = tpu.matmul %0, %1, %cst {dimension_numbers = #tpu.dot_dimension_numbers<[1], [0], [0], [1], [0, 0, 1, 1], [], []>} : vector<128x80xbf16>, vector<80x128xbf16>, vector<128x128xf32> -> vector<128x128xf32>
    %c0_3 = arith.constant 0 : index
    %c0_4 = arith.constant 0 : index
    %3 = vector.load %arg3[%c0_3, %c0_4] : memref<128x128xf32, #tpu.memory_space<vmem>>, vector<128x128xf32>
    tpu.vector_store %arg3[%c0_3, %c0_4], %2 {strides = array<i32>} : memref<128x128xf32, #tpu.memory_space<vmem>>, vector<128x128xf32>,
    %c0_i32 = arith.constant 0 : i32
    %4 = arith.cmpi eq, %arg0, %c0_i32 : i32
    %5 = arith.extui %4 : i1 to i32
    %c0_i32_5 = arith.constant 0 : i32
    %6 = arith.cmpi ne, %5, %c0_i32_5 : i32
    scf.if %6 {
      %cst_12 = arith.constant 0.000000e+00 : f32
      %16 = vector.broadcast %cst_12 : f32 to vector<2x128xf32>
      %c0_13 = arith.constant 0 : index
      %c0_14 = arith.constant 0 : index
      %17 = vector.load %arg4[%c0_13, %c0_14] : memref<2x128xf32, #tpu.memory_space<vmem>>, vector<2x128xf32>
      tpu.vector_store %arg4[%c0_13, %c0_14], %16 {strides = array<i32>} : memref<2x128xf32, #tpu.memory_space<vmem>>, vector<2x128xf32>,
    } else {
    }
    %cst_6 = arith.constant dense<0.000000e+00> : vector<128xf32>
    %7 = vector.multi_reduction <add>, %2, %cst_6 [0] : vector<128x128xf32> to vector<128xf32>
    %8 = vector.shape_cast %7 : vector<128xf32> to vector<1x128xf32>
    %9 = arith.mulf %2, %2 : vector<128x128xf32>
    %cst_7 = arith.constant dense<0.000000e+00> : vector<128xf32>
    %10 = vector.multi_reduction <add>, %9, %cst_7 [0] : vector<128x128xf32> to vector<128xf32>
    %11 = vector.shape_cast %10 : vector<128xf32> to vector<1x128xf32>
    %c0_8 = arith.constant 0 : index
    %c0_9 = arith.constant 0 : index
    %12 = vector.load %arg4[%c0_8, %c0_9] : memref<2x128xf32, #tpu.memory_space<vmem>>, vector<2x128xf32>
    %13 = tpu.concatenate %8, %11 in 0 : vector<1x128xf32>, vector<1x128xf32> -> vector<2x128xf32>
    %14 = arith.addf %12, %13 : vector<2x128xf32>
    %c0_10 = arith.constant 0 : index
    %c0_11 = arith.constant 0 : index
    %15 = vector.load %arg4[%c0_10, %c0_11] : memref<2x128xf32, #tpu.memory_space<vmem>>, vector<2x128xf32>
    tpu.vector_store %arg4[%c0_10, %c0_11], %14 {strides = array<i32>} : memref<2x128xf32, #tpu.memory_space<vmem>>, vector<2x128xf32>,
    return
  }
  func.func @transform_0(%arg0: i32) -> (i32, i32) {
    %c0_i32 = arith.constant 0 : i32
    %c0_i32_0 = arith.constant 0 : i32
    return %arg0, %c0_i32 : i32, i32
  }
  func.func @transform_1(%arg0: i32) -> (i32, i32) {
    %c0_i32 = arith.constant 0 : i32
    %c0_i32_0 = arith.constant 0 : i32
    %c0_i32_1 = arith.constant 0 : i32
    return %c0_i32, %c0_i32_0 : i32, i32
  }
  func.func @transform_2(%arg0: i32) -> (i32, i32) {
    %c0_i32 = arith.constant 0 : i32
    %c0_i32_0 = arith.constant 0 : i32
    return %arg0, %c0_i32 : i32, i32
  }
  func.func @transform_3(%arg0: i32) -> (i32, i32) {
    %c0_i32 = arith.constant 0 : i32
    %c0_i32_0 = arith.constant 0 : i32
    %c0_i32_1 = arith.constant 0 : i32
    return %c0_i32, %c0_i32_0 : i32, i32
  }
}

module attributes {stable_mosaic.version = 11 : i64} {
  func.func @_matmul_stats_kernel(%arg0: i32, %arg1: memref<128x144xbf16, #tpu.memory_space<vmem>>, %arg2: memref<144x128xbf16, #tpu.memory_space<vmem>>, %arg3: memref<128x128xf32, #tpu.memory_space<vmem>>, %arg4: memref<2x128xf32, #tpu.memory_space<vmem>>) attributes {dimension_semantics = [#tpu.dimension_semantics<arbitrary>], iteration_bounds = array<i64: 1>, scalar_prefetch = 0 : i64, scratch_operands = 0 : i64, tpu.core_type = #tpu.core_type<tc>, window_params = [{transform_indices = @transform_0, window_bounds = array<i64: 128, 144>}, {pipeline_mode = #tpu.pipeline_mode<synchronous>, transform_indices = @transform_1, window_bounds = array<i64: 144, 128>}, {transform_indices = @transform_2, window_bounds = array<i64: 128, 128>}, {pipeline_mode = #tpu.pipeline_mode<synchronous>, transform_indices = @transform_3, window_bounds = array<i64: 2, 128>}]} {
    %c0 = arith.constant 0 : index
    %c0_0 = arith.constant 0 : index
    %0 = vector.load %arg1[%c0, %c0_0] : memref<128x144xbf16, #tpu.memory_space<vmem>>, vector<128x144xbf16>
    %c0_1 = arith.constant 0 : index
    %c0_2 = arith.constant 0 : index
    %1 = vector.load %arg2[%c0_1, %c0_2] : memref<144x128xbf16, #tpu.memory_space<vmem>>, vector<144x128xbf16>
    %cst = arith.constant dense<0.000000e+00> : vector<128x128xf32>
    %2 = tpu.matmul %0, %1, %cst {dimension_numbers = #tpu.dot_dimension_numbers<[1], [0], [0], [1], [0, 0, 1, 1], [], []>} : vector<128x144xbf16>, vector<144x128xbf16>, vector<128x128xf32> -> vector<128x128xf32>
    %c0_3 = arith.constant 0 : index
    %c0_4 = arith.constant 0 : index
    %3 = vector.load %arg3[%c0_3, %c0_4] : memref<128x128xf32, #tpu.memory_space<vmem>>, vector<128x128xf32>
    tpu.vector_store %arg3[%c0_3, %c0_4], %2 {strides = array<i32>} : memref<128x128xf32, #tpu.memory_space<vmem>>, vector<128x128xf32>,
    %c0_i32 = arith.constant 0 : i32
    %4 = arith.cmpi eq, %arg0, %c0_i32 : i32
    %5 = arith.extui %4 : i1 to i32
    %c0_i32_5 = arith.constant 0 : i32
    %6 = arith.cmpi ne, %5, %c0_i32_5 : i32
    scf.if %6 {
      %cst_12 = arith.constant 0.000000e+00 : f32
      %16 = vector.broadcast %cst_12 : f32 to vector<2x128xf32>
      %c0_13 = arith.constant 0 : index
      %c0_14 = arith.constant 0 : index
      %17 = vector.load %arg4[%c0_13, %c0_14] : memref<2x128xf32, #tpu.memory_space<vmem>>, vector<2x128xf32>
      tpu.vector_store %arg4[%c0_13, %c0_14], %16 {strides = array<i32>} : memref<2x128xf32, #tpu.memory_space<vmem>>, vector<2x128xf32>,
    } else {
    }
    %cst_6 = arith.constant dense<0.000000e+00> : vector<128xf32>
    %7 = vector.multi_reduction <add>, %2, %cst_6 [0] : vector<128x128xf32> to vector<128xf32>
    %8 = vector.shape_cast %7 : vector<128xf32> to vector<1x128xf32>
    %9 = arith.mulf %2, %2 : vector<128x128xf32>
    %cst_7 = arith.constant dense<0.000000e+00> : vector<128xf32>
    %10 = vector.multi_reduction <add>, %9, %cst_7 [0] : vector<128x128xf32> to vector<128xf32>
    %11 = vector.shape_cast %10 : vector<128xf32> to vector<1x128xf32>
    %c0_8 = arith.constant 0 : index
    %c0_9 = arith.constant 0 : index
    %12 = vector.load %arg4[%c0_8, %c0_9] : memref<2x128xf32, #tpu.memory_space<vmem>>, vector<2x128xf32>
    %13 = tpu.concatenate %8, %11 in 0 : vector<1x128xf32>, vector<1x128xf32> -> vector<2x128xf32>
    %14 = arith.addf %12, %13 : vector<2x128xf32>
    %c0_10 = arith.constant 0 : index
    %c0_11 = arith.constant 0 : index
    %15 = vector.load %arg4[%c0_10, %c0_11] : memref<2x128xf32, #tpu.memory_space<vmem>>, vector<2x128xf32>
    tpu.vector_store %arg4[%c0_10, %c0_11], %14 {strides = array<i32>} : memref<2x128xf32, #tpu.memory_space<vmem>>, vector<2x128xf32>,
    return
  }
  func.func @transform_0(%arg0: i32) -> (i32, i32) {
    %c0_i32 = arith.constant 0 : i32
    %c0_i32_0 = arith.constant 0 : i32
    return %arg0, %c0_i32 : i32, i32
  }
  func.func @transform_1(%arg0: i32) -> (i32, i32) {
    %c0_i32 = arith.constant 0 : i32
    %c0_i32_0 = arith.constant 0 : i32
    %c0_i32_1 = arith.constant 0 : i32
    return %c0_i32, %c0_i32_0 : i32, i32
  }
  func.func @transform_2(%arg0: i32) -> (i32, i32) {
    %c0_i32 = arith.constant 0 : i32
    %c0_i32_0 = arith.constant 0 : i32
    return %arg0, %c0_i32 : i32, i32
  }
  func.func @transform_3(%arg0: i32) -> (i32, i32) {
    %c0_i32 = arith.constant 0 : i32
    %c0_i32_0 = arith.constant 0 : i32
    %c0_i32_1 = arith.constant 0 : i32
    return %c0_i32, %c0_i32_0 : i32, i32
  }
}

module attributes {stable_mosaic.version = 11 : i64} {
  func.func @_matmul_stats_kernel(%arg0: i32, %arg1: memref<128x288xbf16, #tpu.memory_space<vmem>>, %arg2: memref<288x128xbf16, #tpu.memory_space<vmem>>, %arg3: memref<128x128xf32, #tpu.memory_space<vmem>>, %arg4: memref<2x128xf32, #tpu.memory_space<vmem>>) attributes {dimension_semantics = [#tpu.dimension_semantics<arbitrary>], iteration_bounds = array<i64: 1>, scalar_prefetch = 0 : i64, scratch_operands = 0 : i64, tpu.core_type = #tpu.core_type<tc>, window_params = [{transform_indices = @transform_0, window_bounds = array<i64: 128, 288>}, {pipeline_mode = #tpu.pipeline_mode<synchronous>, transform_indices = @transform_1, window_bounds = array<i64: 288, 128>}, {transform_indices = @transform_2, window_bounds = array<i64: 128, 128>}, {pipeline_mode = #tpu.pipeline_mode<synchronous>, transform_indices = @transform_3, window_bounds = array<i64: 2, 128>}]} {
    %c0 = arith.constant 0 : index
    %c0_0 = arith.constant 0 : index
    %0 = vector.load %arg1[%c0, %c0_0] : memref<128x288xbf16, #tpu.memory_space<vmem>>, vector<128x288xbf16>
    %c0_1 = arith.constant 0 : index
    %c0_2 = arith.constant 0 : index
    %1 = vector.load %arg2[%c0_1, %c0_2] : memref<288x128xbf16, #tpu.memory_space<vmem>>, vector<288x128xbf16>
    %cst = arith.constant dense<0.000000e+00> : vector<128x128xf32>
    %2 = tpu.matmul %0, %1, %cst {dimension_numbers = #tpu.dot_dimension_numbers<[1], [0], [0], [1], [0, 0, 1, 1], [], []>} : vector<128x288xbf16>, vector<288x128xbf16>, vector<128x128xf32> -> vector<128x128xf32>
    %c0_3 = arith.constant 0 : index
    %c0_4 = arith.constant 0 : index
    %3 = vector.load %arg3[%c0_3, %c0_4] : memref<128x128xf32, #tpu.memory_space<vmem>>, vector<128x128xf32>
    tpu.vector_store %arg3[%c0_3, %c0_4], %2 {strides = array<i32>} : memref<128x128xf32, #tpu.memory_space<vmem>>, vector<128x128xf32>,
    %c0_i32 = arith.constant 0 : i32
    %4 = arith.cmpi eq, %arg0, %c0_i32 : i32
    %5 = arith.extui %4 : i1 to i32
    %c0_i32_5 = arith.constant 0 : i32
    %6 = arith.cmpi ne, %5, %c0_i32_5 : i32
    scf.if %6 {
      %cst_12 = arith.constant 0.000000e+00 : f32
      %16 = vector.broadcast %cst_12 : f32 to vector<2x128xf32>
      %c0_13 = arith.constant 0 : index
      %c0_14 = arith.constant 0 : index
      %17 = vector.load %arg4[%c0_13, %c0_14] : memref<2x128xf32, #tpu.memory_space<vmem>>, vector<2x128xf32>
      tpu.vector_store %arg4[%c0_13, %c0_14], %16 {strides = array<i32>} : memref<2x128xf32, #tpu.memory_space<vmem>>, vector<2x128xf32>,
    } else {
    }
    %cst_6 = arith.constant dense<0.000000e+00> : vector<128xf32>
    %7 = vector.multi_reduction <add>, %2, %cst_6 [0] : vector<128x128xf32> to vector<128xf32>
    %8 = vector.shape_cast %7 : vector<128xf32> to vector<1x128xf32>
    %9 = arith.mulf %2, %2 : vector<128x128xf32>
    %cst_7 = arith.constant dense<0.000000e+00> : vector<128xf32>
    %10 = vector.multi_reduction <add>, %9, %cst_7 [0] : vector<128x128xf32> to vector<128xf32>
    %11 = vector.shape_cast %10 : vector<128xf32> to vector<1x128xf32>
    %c0_8 = arith.constant 0 : index
    %c0_9 = arith.constant 0 : index
    %12 = vector.load %arg4[%c0_8, %c0_9] : memref<2x128xf32, #tpu.memory_space<vmem>>, vector<2x128xf32>
    %13 = tpu.concatenate %8, %11 in 0 : vector<1x128xf32>, vector<1x128xf32> -> vector<2x128xf32>
    %14 = arith.addf %12, %13 : vector<2x128xf32>
    %c0_10 = arith.constant 0 : index
    %c0_11 = arith.constant 0 : index
    %15 = vector.load %arg4[%c0_10, %c0_11] : memref<2x128xf32, #tpu.memory_space<vmem>>, vector<2x128xf32>
    tpu.vector_store %arg4[%c0_10, %c0_11], %14 {strides = array<i32>} : memref<2x128xf32, #tpu.memory_space<vmem>>, vector<2x128xf32>,
    return
  }
  func.func @transform_0(%arg0: i32) -> (i32, i32) {
    %c0_i32 = arith.constant 0 : i32
    %c0_i32_0 = arith.constant 0 : i32
    return %arg0, %c0_i32 : i32, i32
  }
  func.func @transform_1(%arg0: i32) -> (i32, i32) {
    %c0_i32 = arith.constant 0 : i32
    %c0_i32_0 = arith.constant 0 : i32
    %c0_i32_1 = arith.constant 0 : i32
    return %c0_i32, %c0_i32_0 : i32, i32
  }
  func.func @transform_2(%arg0: i32) -> (i32, i32) {
    %c0_i32 = arith.constant 0 : i32
    %c0_i32_0 = arith.constant 0 : i32
    return %arg0, %c0_i32 : i32, i32
  }
  func.func @transform_3(%arg0: i32) -> (i32, i32) {
    %c0_i32 = arith.constant 0 : i32
    %c0_i32_0 = arith.constant 0 : i32
    %c0_i32_1 = arith.constant 0 : i32
    return %c0_i32, %c0_i32_0 : i32, i32
  }
}

module attributes {stable_mosaic.version = 11 : i64} {
  func.func @_matmul_bias_kernel(%arg0: i32, %arg1: memref<128x128xbf16, #tpu.memory_space<vmem>>, %arg2: memref<128x128xbf16, #tpu.memory_space<vmem>>, %arg3: memref<1x128xf32, #tpu.memory_space<vmem>>, %arg4: memref<128x128xf32, #tpu.memory_space<vmem>>) attributes {dimension_semantics = [#tpu.dimension_semantics<parallel>], iteration_bounds = array<i64: 1>, scalar_prefetch = 0 : i64, scratch_operands = 0 : i64, tpu.core_type = #tpu.core_type<tc>, window_params = [{transform_indices = @transform_0, window_bounds = array<i64: 128, 128>}, {pipeline_mode = #tpu.pipeline_mode<synchronous>, transform_indices = @transform_1, window_bounds = array<i64: 128, 128>}, {pipeline_mode = #tpu.pipeline_mode<synchronous>, transform_indices = @transform_2, window_bounds = array<i64: 1, 128>}, {transform_indices = @transform_3, window_bounds = array<i64: 128, 128>}]} {
    %c0 = arith.constant 0 : index
    %c0_0 = arith.constant 0 : index
    %0 = vector.load %arg1[%c0, %c0_0] : memref<128x128xbf16, #tpu.memory_space<vmem>>, vector<128x128xbf16>
    %c0_1 = arith.constant 0 : index
    %c0_2 = arith.constant 0 : index
    %1 = vector.load %arg2[%c0_1, %c0_2] : memref<128x128xbf16, #tpu.memory_space<vmem>>, vector<128x128xbf16>
    %cst = arith.constant dense<0.000000e+00> : vector<128x128xf32>
    %2 = tpu.matmul %0, %1, %cst {dimension_numbers = #tpu.dot_dimension_numbers<[1], [0], [0], [1], [0, 0, 1, 1], [], []>} : vector<128x128xbf16>, vector<128x128xbf16>, vector<128x128xf32> -> vector<128x128xf32>
    %c0_3 = arith.constant 0 : index
    %c0_4 = arith.constant 0 : index
    %3 = vector.load %arg3[%c0_3, %c0_4] : memref<1x128xf32, #tpu.memory_space<vmem>>, vector<1x128xf32>
    %4 = vector.broadcast %3 : vector<1x128xf32> to vector<128x128xf32>
    %5 = arith.addf %2, %4 : vector<128x128xf32>
    %c0_5 = arith.constant 0 : index
    %c0_6 = arith.constant 0 : index
    %6 = vector.load %arg4[%c0_5, %c0_6] : memref<128x128xf32, #tpu.memory_space<vmem>>, vector<128x128xf32>
    tpu.vector_store %arg4[%c0_5, %c0_6], %5 {strides = array<i32>} : memref<128x128xf32, #tpu.memory_space<vmem>>, vector<128x128xf32>,
    return
  }
  func.func @transform_0(%arg0: i32) -> (i32, i32) {
    %c0_i32 = arith.constant 0 : i32
    %c0_i32_0 = arith.constant 0 : i32
    return %arg0, %c0_i32 : i32, i32
  }
  func.func @transform_1(%arg0: i32) -> (i32, i32) {
    %c0_i32 = arith.constant 0 : i32
    %c0_i32_0 = arith.constant 0 : i32
    %c0_i32_1 = arith.constant 0 : i32
    return %c0_i32, %c0_i32_0 : i32, i32
  }
  func.func @transform_2(%arg0: i32) -> (i32, i32) {
    %c0_i32 = arith.constant 0 : i32
    %c0_i32_0 = arith.constant 0 : i32
    %c0_i32_1 = arith.constant 0 : i32
    return %c0_i32, %c0_i32_0 : i32, i32
  }
  func.func @transform_3(%arg0: i32) -> (i32, i32) {
    %c0_i32 = arith.constant 0 : i32
    %c0_i32_0 = arith.constant 0 : i32
    return %arg0, %c0_i32 : i32, i32
  }
}

module attributes {stable_mosaic.version = 11 : i64} {
  func.func @_matmul_stats_kernel(%arg0: i32, %arg1: memref<128x576xbf16, #tpu.memory_space<vmem>>, %arg2: memref<576x128xbf16, #tpu.memory_space<vmem>>, %arg3: memref<128x128xf32, #tpu.memory_space<vmem>>, %arg4: memref<2x128xf32, #tpu.memory_space<vmem>>) attributes {dimension_semantics = [#tpu.dimension_semantics<arbitrary>], iteration_bounds = array<i64: 1>, scalar_prefetch = 0 : i64, scratch_operands = 0 : i64, tpu.core_type = #tpu.core_type<tc>, window_params = [{transform_indices = @transform_0, window_bounds = array<i64: 128, 576>}, {pipeline_mode = #tpu.pipeline_mode<synchronous>, transform_indices = @transform_1, window_bounds = array<i64: 576, 128>}, {transform_indices = @transform_2, window_bounds = array<i64: 128, 128>}, {pipeline_mode = #tpu.pipeline_mode<synchronous>, transform_indices = @transform_3, window_bounds = array<i64: 2, 128>}]} {
    %c0 = arith.constant 0 : index
    %c0_0 = arith.constant 0 : index
    %0 = vector.load %arg1[%c0, %c0_0] : memref<128x576xbf16, #tpu.memory_space<vmem>>, vector<128x576xbf16>
    %c0_1 = arith.constant 0 : index
    %c0_2 = arith.constant 0 : index
    %1 = vector.load %arg2[%c0_1, %c0_2] : memref<576x128xbf16, #tpu.memory_space<vmem>>, vector<576x128xbf16>
    %cst = arith.constant dense<0.000000e+00> : vector<128x128xf32>
    %2 = tpu.matmul %0, %1, %cst {dimension_numbers = #tpu.dot_dimension_numbers<[1], [0], [0], [1], [0, 0, 1, 1], [], []>} : vector<128x576xbf16>, vector<576x128xbf16>, vector<128x128xf32> -> vector<128x128xf32>
    %c0_3 = arith.constant 0 : index
    %c0_4 = arith.constant 0 : index
    %3 = vector.load %arg3[%c0_3, %c0_4] : memref<128x128xf32, #tpu.memory_space<vmem>>, vector<128x128xf32>
    tpu.vector_store %arg3[%c0_3, %c0_4], %2 {strides = array<i32>} : memref<128x128xf32, #tpu.memory_space<vmem>>, vector<128x128xf32>,
    %c0_i32 = arith.constant 0 : i32
    %4 = arith.cmpi eq, %arg0, %c0_i32 : i32
    %5 = arith.extui %4 : i1 to i32
    %c0_i32_5 = arith.constant 0 : i32
    %6 = arith.cmpi ne, %5, %c0_i32_5 : i32
    scf.if %6 {
      %cst_12 = arith.constant 0.000000e+00 : f32
      %16 = vector.broadcast %cst_12 : f32 to vector<2x128xf32>
      %c0_13 = arith.constant 0 : index
      %c0_14 = arith.constant 0 : index
      %17 = vector.load %arg4[%c0_13, %c0_14] : memref<2x128xf32, #tpu.memory_space<vmem>>, vector<2x128xf32>
      tpu.vector_store %arg4[%c0_13, %c0_14], %16 {strides = array<i32>} : memref<2x128xf32, #tpu.memory_space<vmem>>, vector<2x128xf32>,
    } else {
    }
    %cst_6 = arith.constant dense<0.000000e+00> : vector<128xf32>
    %7 = vector.multi_reduction <add>, %2, %cst_6 [0] : vector<128x128xf32> to vector<128xf32>
    %8 = vector.shape_cast %7 : vector<128xf32> to vector<1x128xf32>
    %9 = arith.mulf %2, %2 : vector<128x128xf32>
    %cst_7 = arith.constant dense<0.000000e+00> : vector<128xf32>
    %10 = vector.multi_reduction <add>, %9, %cst_7 [0] : vector<128x128xf32> to vector<128xf32>
    %11 = vector.shape_cast %10 : vector<128xf32> to vector<1x128xf32>
    %c0_8 = arith.constant 0 : index
    %c0_9 = arith.constant 0 : index
    %12 = vector.load %arg4[%c0_8, %c0_9] : memref<2x128xf32, #tpu.memory_space<vmem>>, vector<2x128xf32>
    %13 = tpu.concatenate %8, %11 in 0 : vector<1x128xf32>, vector<1x128xf32> -> vector<2x128xf32>
    %14 = arith.addf %12, %13 : vector<2x128xf32>
    %c0_10 = arith.constant 0 : index
    %c0_11 = arith.constant 0 : index
    %15 = vector.load %arg4[%c0_10, %c0_11] : memref<2x128xf32, #tpu.memory_space<vmem>>, vector<2x128xf32>
    tpu.vector_store %arg4[%c0_10, %c0_11], %14 {strides = array<i32>} : memref<2x128xf32, #tpu.memory_space<vmem>>, vector<2x128xf32>,
    return
  }
  func.func @transform_0(%arg0: i32) -> (i32, i32) {
    %c0_i32 = arith.constant 0 : i32
    %c0_i32_0 = arith.constant 0 : i32
    return %arg0, %c0_i32 : i32, i32
  }
  func.func @transform_1(%arg0: i32) -> (i32, i32) {
    %c0_i32 = arith.constant 0 : i32
    %c0_i32_0 = arith.constant 0 : i32
    %c0_i32_1 = arith.constant 0 : i32
    return %c0_i32, %c0_i32_0 : i32, i32
  }
  func.func @transform_2(%arg0: i32) -> (i32, i32) {
    %c0_i32 = arith.constant 0 : i32
    %c0_i32_0 = arith.constant 0 : i32
    return %arg0, %c0_i32 : i32, i32
  }
  func.func @transform_3(%arg0: i32) -> (i32, i32) {
    %c0_i32 = arith.constant 0 : i32
    %c0_i32_0 = arith.constant 0 : i32
    %c0_i32_1 = arith.constant 0 : i32
    return %c0_i32, %c0_i32_0 : i32, i32
  }
}

</mosaic_0001>

<bundles_post_ra>
// kernel: unet_encoder_forward.22
= control target key start
LH: loop header
LB: loop body
LE: loop exit
PB: predicated region body
PF: predicated region fallthrough
CT: control target
= control target key end

     0   :  { %s391_s0 = inlined_call_operand.vmem [shape: f32[128,128], index: 0, kind: input, shape index: {}]   ;;  %s392_s1 = inlined_call_operand.vmem [shape: f32[1,128], index: 1, kind: input, shape index: {}]   ;;  %s393_s2 = inlined_call_operand.vmem [shape: f32[1,128], index: 2, kind: input, shape index: {}]   ;;  %s394_s3 = inlined_call_operand.vmem [shape: bf16[128,128], index: 3, kind: output, shape index: {}]  }
   0x1   :  { %v14_v0 = vld [vmem:[%s391_s0] sm:$0xff]  ;;  %v15_v1 = vld [vmem:[%s391_s0 + $0x8] sm:$0xff]  ;;  %v16_v6 = vld [vmem:[%s391_s0 + $0x10] sm:$0xff] }
   0x2   :  { %v286_v2 = vld [vmem:[%s392_s1] ss:$0 sm:$0xff]  ;;  %v17_v7 = vld [vmem:[%s391_s0 + $0x18] sm:$0xff]  ;;  %v19_v11 = vld [vmem:[%s391_s0 + $0x28] sm:$0xff] }
   0x3   :  { %v37_v3 = vmul.f32 %v286_v2, %v14_v0  ;;  %v38_v4 = vmul.f32 %v286_v2, %v15_v1  ;;  %v293_v5 = vld [vmem:[%s393_s2] ss:$0 sm:$0xff]  ;;  %v39_v8 = vmul.f32 %v286_v2, %v16_v6  ;;  %v40_v9 = vmul.f32 %v286_v2, %v17_v7  ;;  %v20_v12 = vld [vmem:[%s391_s0 + $0x30] sm:$0xff]  ;;  %v21_v17 = vld [vmem:[%s391_s0 + $0x38] sm:$0xff] }
   0x4   :  { %v18_v10 = vld [vmem:[%s391_s0 + $0x20] sm:$0xff]  ;;  %v42_v16 = vmul.f32 %v286_v2, %v19_v11  ;;  %v43_v20 = vmul.f32 %v286_v2, %v20_v12  ;;  %v44_v21 = vmul.f32 %v286_v2, %v21_v17  ;;  %v23_v27 = vld [vmem:[%s391_s0 + $0x48] sm:$0xff]  ;;  %v24_v32 = vld [vmem:[%s391_s0 + $0x50] sm:$0xff] }
   0x5   :  { %v60_v13 = vadd.f32 %v293_v5, %v37_v3  ;;  %v61_v14 = vadd.f32 %v293_v5, %v38_v4  ;;  %v41_v15 = vmul.f32 %v286_v2, %v18_v10  ;;  %v62_v18 = vadd.f32 %v293_v5, %v39_v8  ;;  %v22_v22 = vld [vmem:[%s391_s0 + $0x40] sm:$0xff]  ;;  %v25_v33 = vld [vmem:[%s391_s0 + $0x58] sm:$0xff]  ;;  %v27_v39 = vld [vmem:[%s391_s0 + $0x68] sm:$0xff] }
   0x6   :  { %v63_v19 = vadd.f32 %v293_v5, %v40_v9  ;;  %v65_v26 = vadd.f32 %v293_v5, %v42_v16  ;;  %v66_v30 = vadd.f32 %v293_v5, %v43_v20  ;;  %v67_v31 = vadd.f32 %v293_v5, %v44_v21  ;;  %v26_v38 = vld [vmem:[%s391_s0 + $0x60] sm:$0xff]  ;;  %v28_v44 = vld [vmem:[%s391_s0 + $0x70] sm:$0xff]  ;;  %v29_v49 = vld [vmem:[%s391_s0 + $0x78] sm:$0xff] }
   0x7   :  { %v76_v23 = vmax.f32 %v60_v13, 0.0  ;;  %v77_v24 = vmax.f32 %v61_v14, 0.0  ;;  %v64_v25 = vadd.f32 %v293_v5, %v41_v15  ;;  %v78_v28 = vmax.f32 %v62_v18, 0.0 }
   0x8   :  { %v79_v29 = vmax.f32 %v63_v19, 0.0  ;;  %v81_v36 = vmax.f32 %v65_v26, 0.0  ;;  %v45_v37 = vmul.f32 %v286_v2, %v22_v22  ;;  %v82_v41 = vmax.f32 %v66_v30, 0.0 }
   0x9   :  { %v213_v34 = vpack.c.bf16 %v77_v24, %v76_v23  ;;  %v80_v35 = vmax.f32 %v64_v25, 0.0  ;;  %v83_v42 = vmax.f32 %v67_v31, 0.0  ;;  %v46_v43 = vmul.f32 %v286_v2, %v23_v27 }
   0xa   :  { %v218_v40 = vpack.c.bf16 %v79_v29, %v78_v28  ;;  %v68_v46 = vadd.f32 %v293_v5, %v45_v37  ;;  %v47_v47 = vmul.f32 %v286_v2, %v24_v32  ;;  %v48_v48 = vmul.f32 %v286_v2, %v25_v33 }
   0xb   :  { %214 = vst [vmem:[%s394_s3] sm:$0xff] %v213_v34   ;;  %v223_v45 = vpack.c.bf16 %v81_v36, %v80_v35  ;;  %v228_v50 = vpack.c.bf16 %v83_v42, %v82_v41  ;;  %v69_v51 = vadd.f32 %v293_v5, %v46_v43  ;;  %v49_v52 = vmul.f32 %v286_v2, %v26_v38 }
   0xc   :  { %250 = vst [vmem:[%s394_s3 + $0x8] sm:$0xff] %v218_v40   ;;  %v50_v53 = vmul.f32 %v286_v2, %v27_v39  ;;  %v84_v54 = vmax.f32 %v68_v46, 0.0  ;;  %v70_v55 = vadd.f32 %v293_v5, %v47_v47  ;;  %v71_v56 = vadd.f32 %v293_v5, %v48_v48 }
   0xd   :  { %251 = vst [vmem:[%s394_s3 + $0x10] sm:$0xff] %v223_v45   ;;  %v51_v57 = vmul.f32 %v286_v2, %v28_v44  ;;  %252 = vst [vmem:[%s394_s3 + $0x18] sm:$0xff] %v228_v50   ;;  %v85_v58 = vmax.f32 %v69_v51, 0.0  ;;  %v72_v59 = vadd.f32 %v293_v5, %v49_v52  ;;  %v52_v61 = vmul.f32 %v286_v2, %v29_v49 }
   0xe   :  { %v73_v60 = vadd.f32 %v293_v5, %v50_v53  ;;  %v86_v62 = vmax.f32 %v70_v55, 0.0  ;;  %v87_v63 = vmax.f32 %v71_v56, 0.0 }
   0xf   :  { %v74_v0 = vadd.f32 %v293_v5, %v51_v57  ;;  %v233_v1 = vpack.c.bf16 %v85_v58, %v84_v54  ;;  %v88_v3 = vmax.f32 %v72_v59, 0.0  ;;  %v75_v6 = vadd.f32 %v293_v5, %v52_v61 }
  0x10   :  { %v89_v4 = vmax.f32 %v73_v60, 0.0  ;;  %v238_v7 = vpack.c.bf16 %v87_v63, %v86_v62 }
  0x11   :  { %v90_v8 = vmax.f32 %v74_v0, 0.0  ;;  %253 = vst [vmem:[%s394_s3 + $0x20] sm:$0xff] %v233_v1   ;;  %v91_v10 = vmax.f32 %v75_v6, 0.0 }
  0x12   :  { %v243_v9 = vpack.c.bf16 %v89_v4, %v88_v3  ;;  %254 = vst [vmem:[%s394_s3 + $0x28] sm:$0xff] %v238_v7  }
  0x13   :  { %v248_v2 = vpack.c.bf16 %v91_v10, %v90_v8 }
  0x14   :  { %255 = vst [vmem:[%s394_s3 + $0x30] sm:$0xff] %v243_v9  }
  0x15   :  { %256 = vst [vmem:[%s394_s3 + $0x38] sm:$0xff] %v248_v2  }

// kernel: unet_encoder_forward.21
= control target key start
LH: loop header
LB: loop body
LE: loop exit
PB: predicated region body
PF: predicated region fallthrough
CT: control target
= control target key end

     0   :  { %vm86_vm0 = vcmask 261120   ;;  %v363_v10 = vmov 0.0   ;;  %vm288_vm1 = vcmask 1040384   ;;  %s479_s1 = inlined_call_operand.vmem [shape: bf16[32,128], index: 1, kind: input, shape index: {}]   ;;  %s480_s0 = inlined_call_operand.vmem [shape: bf16[128,32], index: 0, kind: input, shape index: {}]   ;;  %s481_s3 = inlined_call_operand.vmem [shape: f32[2,128], index: 3, kind: output, shape index: {1}]   ;;  %s482_s2 = inlined_call_operand.vmem [shape: f32[128,128], index: 2, kind: output, shape index: {0}]  }
   0x1   :  { %v353_v0 = vld [vmem:[%s479_s1 + $0x8] sm:$0xff]   ;;  %v354_v1 = vld [vmem:[%s479_s1] sm:$0xff]   ;;  %v357_v4 = vld [vmem:[%s480_s0 + $0x10] sm:$0xff]   ;;  %228 = vst [vmem:[%s481_s3] sm:$0x3] %v363_v10 }
   0x2   :  { %328 = vmatprep.subr.bf16.mxu0 %v353_v0  ;;  %v355_v2 = vld [vmem:[%s480_s0] sm:$0xff]   ;;  %348 = vmatprep.subr.bf16.mxu1 %v353_v0  ;;  %v356_v3 = vld [vmem:[%s480_s0 + $0x8] sm:$0xff]   ;;  %v361_v7 = vld [vmem:[%s480_s0 + $0x30] sm:$0xff]  }
   0x3   :  { %329 = vmatpush3.bf16.msra.mxu0 %v353_v0  ;;  %350 = vmatpush3.bf16.msra.mxu1 %v353_v0  ;;  %v359_v5 = vld [vmem:[%s480_s0 + $0x20] sm:$0xff]   ;;  %v360_v6 = vld [vmem:[%s480_s0 + $0x28] sm:$0xff]   ;;  %v358_v8 = vld [vmem:[%s480_s0 + $0x18] sm:$0xff]  }
   0x4   :  { %330 = vmatprep.subr.bf16.mxu0 %v354_v1  ;;  %332 = vmatprep.mubr.msk.bf16.mxu0 %vm86_vm0, %v355_v2  ;;  %v362_v9 = vld [vmem:[%s480_s0 + $0x38] sm:$0xff]  }
   0x5   :  { %349 = vmatprep.subr.bf16.mxu1 %v354_v1  ;;  %340 = vmatprep.mubr.msk.bf16.mxu1 %vm86_vm0, %v359_v5 }
   0x7   :  { %331 = vmatpush3.bf16.msra.mxu0 %v354_v1  ;;  %351 = vmatpush3.bf16.msra.mxu1 %v354_v1 }
   0xa   :  { %333 = vmatmul.mubr.msk.bf16.vlgmr.msra.gmra.mxu0 %vm86_vm0, %v356_v3  ;;  %341 = vmatmul.mubr.msk.bf16.vlgmr.msra.gmra.mxu1 %vm86_vm0, %v360_v6 }
   0xb   :  { %336 = vmatprep.mubr.msk.bf16.mxu0 %vm86_vm0, %v357_v4  ;;  %344 = vmatprep.mubr.msk.bf16.mxu1 %vm86_vm0, %v361_v7 }
  0x12   :  { %337 = vmatmul.mubr.msk.bf16.gmra.mxu0 %vm86_vm0, %v358_v8  ;;  %345 = vmatmul.mubr.msk.bf16.gmra.mxu1 %vm86_vm0, %v362_v9 }
  0xca   :  { %v334_v11 = vpop.f32.mrf.mxu0  ;;  %v342_v12 = vpop.f32.mrf.mxu1 }
  0xcb   :  { %210 = vst [vmem:[%s482_s2 + $0x10] sm:$0xff] %v334_v11  ;;  %218 = vst [vmem:[%s482_s2 + $0x50] sm:$0xff] %v342_v12  ;;  %v252_v24 = vmul.f32 %v334_v11, %v334_v11  ;;  %v260_v54 = vmul.f32 %v342_v12, %v342_v12 }
  0xcc   :  { %v145_v13 = vpop.f32.mrf.mxu0  ;;  %v177_v14 = vpop.f32.mrf.mxu1 }
  0xcd   :  { %208 = vst [vmem:[%s482_s2] sm:$0xff] %v145_v13  ;;  %216 = vst [vmem:[%s482_s2 + $0x40] sm:$0xff] %v177_v14  ;;  %v250_v19 = vmul.f32 %v145_v13, %v145_v13  ;;  %v258_v48 = vmul.f32 %v177_v14, %v177_v14 }
  0xce   :  { %v335_v15 = vpop.f32.mrf.mxu0  ;;  %v343_v16 = vpop.f32.mrf.mxu1 }
  0xcf   :  { %211 = vst [vmem:[%s482_s2 + $0x18] sm:$0xff] %v335_v15  ;;  %219 = vst [vmem:[%s482_s2 + $0x58] sm:$0xff] %v343_v16  ;;  %v253_v29 = vmul.f32 %v335_v15, %v335_v15  ;;  %v261_v57 = vmul.f32 %v343_v16, %v343_v16 }
  0xd0   :  { %v148_v17 = vpop.f32.mrf.mxu0  ;;  %v180_v18 = vpop.f32.mrf.mxu1 }
  0xd1   :  { %209 = vst [vmem:[%s482_s2 + $0x8] sm:$0xff] %v148_v17  ;;  %v229_v20 = vadd.f32 %v148_v17, %v145_v13  ;;  %v251_v21 = vmul.f32 %v148_v17, %v148_v17  ;;  %217 = vst [vmem:[%s482_s2 + $0x48] sm:$0xff] %v180_v18  ;;  %v259_v52 = vmul.f32 %v180_v18, %v180_v18 }
  0xd2   :  { %v338_v22 = vpop.f32.mrf.mxu0  ;;  %v346_v23 = vpop.f32.mrf.mxu1 }
  0xd3   :  { %v230_v25 = vadd.f32 %v334_v11, %v229_v20  ;;  %v266_v26 = vadd.f32 %v251_v21, %v250_v19  ;;  %214 = vst [vmem:[%s482_s2 + $0x30] sm:$0xff] %v338_v22  ;;  %222 = vst [vmem:[%s482_s2 + $0x70] sm:$0xff] %v346_v23  ;;  %v256_v42 = vmul.f32 %v338_v22, %v338_v22  ;;  %v287_v21 = vld [vmem:[%s481_s3] sm:$0x3] }
  0xd4   :  { %v161_v27 = vpop.f32.mrf.mxu0  ;;  %v193_v28 = vpop.f32.mrf.mxu1  ;;  %v264_v2 = vmul.f32 %v346_v23, %v346_v23 }
  0xd5   :  { %v267_v30 = vadd.f32 %v266_v26, %v252_v24  ;;  %212 = vst [vmem:[%s482_s2 + $0x20] sm:$0xff] %v161_v27  ;;  %v231_v31 = vadd.f32 %v335_v15, %v230_v25  ;;  %220 = vst [vmem:[%s482_s2 + $0x60] sm:$0xff] %v193_v28  ;;  %v254_v35 = vmul.f32 %v161_v27, %v161_v27 }
  0xd6   :  { %v339_v32 = vpop.f32.mrf.mxu0  ;;  %v347_v33 = vpop.f32.mrf.mxu1  ;;  %v262_v61 = vmul.f32 %v193_v28, %v193_v28 }
  0xd7   :  { %v232_v34 = vadd.f32 %v231_v31, %v161_v27  ;;  %v268_v36 = vadd.f32 %v267_v30, %v253_v29  ;;  %215 = vst [vmem:[%s482_s2 + $0x38] sm:$0xff] %v339_v32  ;;  %223 = vst [vmem:[%s482_s2 + $0x78] sm:$0xff] %v347_v33  ;;  %v257_v45 = vmul.f32 %v339_v32, %v339_v32 }
  0xd8   :  { %v164_v37 = vpop.f32.mrf.mxu0  ;;  %v196_v38 = vpop.f32.mrf.mxu1  ;;  %v265_v5 = vmul.f32 %v347_v33, %v347_v33 }
  0xd9   :  { %v269_v39 = vadd.f32 %v268_v36, %v254_v35  ;;  %213 = vst [vmem:[%s482_s2 + $0x28] sm:$0xff] %v164_v37  ;;  %v233_v40 = vadd.f32 %v232_v34, %v164_v37  ;;  %v255_v41 = vmul.f32 %v164_v37, %v164_v37  ;;  %221 = vst [vmem:[%s482_s2 + $0x68] sm:$0xff] %v196_v38 }
  0xda   :  { %v263_v1 = vmul.f32 %v196_v38, %v196_v38 }
  0xdb   :  { %v234_v43 = vadd.f32 %v338_v22, %v233_v40  ;;  %v270_v44 = vadd.f32 %v269_v39, %v255_v41 }
  0xdd   :  { %v235_v46 = vadd.f32 %v339_v32, %v234_v43  ;;  %v271_v47 = vadd.f32 %v270_v44, %v256_v42 }
  0xdf   :  { %v272_v49 = vadd.f32 %v271_v47, %v257_v45  ;;  %v236_v50 = vadd.f32 %v235_v46, %v177_v14 }
  0xe1   :  { %v237_v51 = vadd.f32 %v236_v50, %v180_v18  ;;  %v273_v53 = vadd.f32 %v272_v49, %v258_v48 }
  0xe3   :  { %v238_v55 = vadd.f32 %v342_v12, %v237_v51  ;;  %v274_v56 = vadd.f32 %v273_v53, %v259_v52 }
  0xe5   :  { %v275_v58 = vadd.f32 %v274_v56, %v260_v54  ;;  %v239_v59 = vadd.f32 %v343_v16, %v238_v55 }
  0xe7   :  { %v240_v60 = vadd.f32 %v239_v59, %v193_v28  ;;  %v276_v62 = vadd.f32 %v275_v58, %v261_v57 }
  0xe9   :  { %v277_v63 = vadd.f32 %v276_v62, %v262_v61  ;;  %v241_v0 = vadd.f32 %v240_v60, %v196_v38 }
  0xeb   :  { %v242_v3 = vadd.f32 %v346_v23, %v241_v0  ;;  %v278_v4 = vadd.f32 %v277_v63, %v263_v1 }
  0xed   :  { %v243_v6 = vadd.f32 %v347_v33, %v242_v3  ;;  %v279_v7 = vadd.f32 %v278_v4, %v264_v2 }
  0xef   :  { %v244_v8 = vrot.slane %v243_v6, 4  ;;  %v280_v9 = vadd.f32 %v279_v7, %v265_v5 }
  0xf1   :  { %v245_v10 = vadd.f32 %v244_v8, %v243_v6  ;;  %v281_v11 = vrot.slane %v280_v9, 4 }
  0xf3   :  { %v246_v12 = vrot.slane %v245_v10, 2  ;;  %v282_v13 = vadd.f32 %v281_v11, %v280_v9 }
  0xf5   :  { %v247_v14 = vadd.f32 %v246_v12, %v245_v10  ;;  %v283_v15 = vrot.slane %v282_v13, 2 }
  0xf7   :  { %v248_v16 = vrot.slane %v247_v14, 1  ;;  %v284_v17 = vadd.f32 %v283_v15, %v282_v13 }
  0xf9   :  { %v285_v18 = vrot.slane %v284_v17, 1  ;;  %v249_v19 = vadd.f32 %v248_v16, %v247_v14 }
  0xfb   :  { %v286_v20 = vadd.f32 %v285_v18, %v284_v17 }
  0xfd   :  { %v289_v22 = vsel %vm288_vm1, %v249_v19, %v286_v20 }
  0xfe   :  { %v290_v23 = vadd.f32 %v289_v22, %v287_v21 }
 0x100   :  { %291 = vst [vmem:[%s481_s3] sm:$0x3] %v290_v23 }

// kernel: unet_encoder_forward.23
= control target key start
LH: loop header
LB: loop body
LE: loop exit
PB: predicated region body
PF: predicated region fallthrough
CT: control target
= control target key end

     0   :  { %vm94_vm0 = vcmask 392192   ;;  %v378_v11 = vmov 0.0   ;;  %vm296_vm1 = vcmask 1040384   ;;  %s497_s1 = inlined_call_operand.vmem [shape: bf16[48,128], index: 1, kind: input, shape index: {}]   ;;  %s498_s0 = inlined_call_operand.vmem [shape: bf16[128,48], index: 0, kind: input, shape index: {}]   ;;  %s499_s3 = inlined_call_operand.vmem [shape: f32[2,128], index: 3, kind: output, shape index: {1}]   ;;  %s500_s2 = inlined_call_operand.vmem [shape: f32[128,128], index: 2, kind: output, shape index: {0}]  }
   0x1   :  { %v367_v0 = vld [vmem:[%s497_s1 + $0x10] sm:$0xff]   ;;  %v368_v1 = vld [vmem:[%s497_s1 + $0x8] sm:$0xff]   ;;  %v370_v2 = vld [vmem:[%s498_s0] sm:$0xff]   ;;  %236 = vst [vmem:[%s499_s3] sm:$0x3] %v378_v11 }
   0x2   :  { %338 = vmatprep.subr.bf16.mxu0 %v367_v0  ;;  %360 = vmatprep.subr.bf16.mxu1 %v367_v0  ;;  %v369_v3 = vld [vmem:[%s497_s1] sm:$0xff]   ;;  %v371_v5 = vld [vmem:[%s498_s0 + $0x8] sm:$0xff]   ;;  %v372_v7 = vld [vmem:[%s498_s0 + $0x10] sm:$0xff]  }
   0x3   :  { %339 = vmatpush3.bf16.msra.mxu0 %v367_v0  ;;  %363 = vmatpush3.bf16.msra.mxu1 %v367_v0  ;;  %v374_v4 = vld [vmem:[%s498_s0 + $0x20] sm:$0xff]   ;;  %v375_v6 = vld [vmem:[%s498_s0 + $0x28] sm:$0xff]   ;;  %v376_v8 = vld [vmem:[%s498_s0 + $0x30] sm:$0xff]  }
   0x4   :  { %340 = vmatprep.subr.bf16.mxu0 %v368_v1  ;;  %361 = vmatprep.subr.bf16.mxu1 %v368_v1  ;;  %v373_v9 = vld [vmem:[%s498_s0 + $0x18] sm:$0xff]  }
   0x5   :  { %344 = vmatprep.mubr.msk.bf16.mxu0 %vm94_vm0, %v370_v2  ;;  %352 = vmatprep.mubr.msk.bf16.mxu1 %vm94_vm0, %v374_v4  ;;  %v377_v10 = vld [vmem:[%s498_s0 + $0x38] sm:$0xff]  }
   0x7   :  { %341 = vmatpush3.bf16.msra.mxu0 %v368_v1  ;;  %364 = vmatpush3.bf16.msra.mxu1 %v368_v1 }
   0x8   :  { %342 = vmatprep.subr.bf16.mxu0 %v369_v3  ;;  %362 = vmatprep.subr.bf16.mxu1 %v369_v3 }
   0xb   :  { %343 = vmatpush3.bf16.msra.mxu0 %v369_v3  ;;  %365 = vmatpush3.bf16.msra.mxu1 %v369_v3 }
   0xe   :  { %345 = vmatmul.mubr.msk.bf16.vlgmr.msra.gmra.mxu0 %vm94_vm0, %v371_v5  ;;  %353 = vmatmul.mubr.msk.bf16.vlgmr.msra.gmra.mxu1 %vm94_vm0, %v375_v6 }
   0xf   :  { %348 = vmatprep.mubr.msk.bf16.mxu0 %vm94_vm0, %v372_v7  ;;  %356 = vmatprep.mubr.msk.bf16.mxu1 %vm94_vm0, %v376_v8 }
  0x16   :  { %349 = vmatmul.mubr.msk.bf16.gmra.mxu0 %vm94_vm0, %v373_v9  ;;  %357 = vmatmul.mubr.msk.bf16.gmra.mxu1 %vm94_vm0, %v377_v10 }
  0xce   :  { %v346_v12 = vpop.f32.mrf.mxu0  ;;  %v354_v13 = vpop.f32.mrf.mxu1 }
  0xcf   :  { %218 = vst [vmem:[%s500_s2 + $0x10] sm:$0xff] %v346_v12  ;;  %226 = vst [vmem:[%s500_s2 + $0x50] sm:$0xff] %v354_v13  ;;  %v260_v25 = vmul.f32 %v346_v12, %v346_v12  ;;  %v268_v55 = vmul.f32 %v354_v13, %v354_v13 }
  0xd0   :  { %v153_v14 = vpop.f32.mrf.mxu0  ;;  %v185_v15 = vpop.f32.mrf.mxu1 }
  0xd1   :  { %216 = vst [vmem:[%s500_s2] sm:$0xff] %v153_v14  ;;  %224 = vst [vmem:[%s500_s2 + $0x40] sm:$0xff] %v185_v15  ;;  %v258_v20 = vmul.f32 %v153_v14, %v153_v14  ;;  %v266_v49 = vmul.f32 %v185_v15, %v185_v15 }
  0xd2   :  { %v347_v16 = vpop.f32.mrf.mxu0  ;;  %v355_v17 = vpop.f32.mrf.mxu1 }
  0xd3   :  { %219 = vst [vmem:[%s500_s2 + $0x18] sm:$0xff] %v347_v16  ;;  %227 = vst [vmem:[%s500_s2 + $0x58] sm:$0xff] %v355_v17  ;;  %v261_v30 = vmul.f32 %v347_v16, %v347_v16  ;;  %v269_v58 = vmul.f32 %v355_v17, %v355_v17 }
  0xd4   :  { %v156_v18 = vpop.f32.mrf.mxu0  ;;  %v188_v19 = vpop.f32.mrf.mxu1 }
  0xd5   :  { %217 = vst [vmem:[%s500_s2 + $0x8] sm:$0xff] %v156_v18  ;;  %v237_v21 = vadd.f32 %v156_v18, %v153_v14  ;;  %v259_v22 = vmul.f32 %v156_v18, %v156_v18  ;;  %225 = vst [vmem:[%s500_s2 + $0x48] sm:$0xff] %v188_v19  ;;  %v267_v53 = vmul.f32 %v188_v19, %v188_v19 }
  0xd6   :  { %v350_v23 = vpop.f32.mrf.mxu0  ;;  %v358_v24 = vpop.f32.mrf.mxu1 }
  0xd7   :  { %v238_v26 = vadd.f32 %v346_v12, %v237_v21  ;;  %v274_v27 = vadd.f32 %v259_v22, %v258_v20  ;;  %222 = vst [vmem:[%s500_s2 + $0x30] sm:$0xff] %v350_v23  ;;  %230 = vst [vmem:[%s500_s2 + $0x70] sm:$0xff] %v358_v24  ;;  %v264_v43 = vmul.f32 %v350_v23, %v350_v23  ;;  %v295_v22 = vld [vmem:[%s499_s3] sm:$0x3] }
  0xd8   :  { %v169_v28 = vpop.f32.mrf.mxu0  ;;  %v201_v29 = vpop.f32.mrf.mxu1  ;;  %v272_v3 = vmul.f32 %v358_v24, %v358_v24 }
  0xd9   :  { %v275_v31 = vadd.f32 %v274_v27, %v260_v25  ;;  %220 = vst [vmem:[%s500_s2 + $0x20] sm:$0xff] %v169_v28  ;;  %v239_v32 = vadd.f32 %v347_v16, %v238_v26  ;;  %228 = vst [vmem:[%s500_s2 + $0x60] sm:$0xff] %v201_v29  ;;  %v262_v36 = vmul.f32 %v169_v28, %v169_v28 }
  0xda   :  { %v351_v33 = vpop.f32.mrf.mxu0  ;;  %v359_v34 = vpop.f32.mrf.mxu1  ;;  %v270_v62 = vmul.f32 %v201_v29, %v201_v29 }
  0xdb   :  { %v240_v35 = vadd.f32 %v239_v32, %v169_v28  ;;  %v276_v37 = vadd.f32 %v275_v31, %v261_v30  ;;  %223 = vst [vmem:[%s500_s2 + $0x38] sm:$0xff] %v351_v33  ;;  %231 = vst [vmem:[%s500_s2 + $0x78] sm:$0xff] %v359_v34  ;;  %v265_v46 = vmul.f32 %v351_v33, %v351_v33 }
  0xdc   :  { %v172_v38 = vpop.f32.mrf.mxu0  ;;  %v204_v39 = vpop.f32.mrf.mxu1  ;;  %v273_v6 = vmul.f32 %v359_v34, %v359_v34 }
  0xdd   :  { %v277_v40 = vadd.f32 %v276_v37, %v262_v36  ;;  %221 = vst [vmem:[%s500_s2 + $0x28] sm:$0xff] %v172_v38  ;;  %v241_v41 = vadd.f32 %v240_v35, %v172_v38  ;;  %v263_v42 = vmul.f32 %v172_v38, %v172_v38  ;;  %229 = vst [vmem:[%s500_s2 + $0x68] sm:$0xff] %v204_v39 }
  0xde   :  { %v271_v2 = vmul.f32 %v204_v39, %v204_v39 }
  0xdf   :  { %v242_v44 = vadd.f32 %v350_v23, %v241_v41  ;;  %v278_v45 = vadd.f32 %v277_v40, %v263_v42 }
  0xe1   :  { %v243_v47 = vadd.f32 %v351_v33, %v242_v44  ;;  %v279_v48 = vadd.f32 %v278_v45, %v264_v43 }
  0xe3   :  { %v280_v50 = vadd.f32 %v279_v48, %v265_v46  ;;  %v244_v51 = vadd.f32 %v243_v47, %v185_v15 }
  0xe5   :  { %v245_v52 = vadd.f32 %v244_v51, %v188_v19  ;;  %v281_v54 = vadd.f32 %v280_v50, %v266_v49 }
  0xe7   :  { %v246_v56 = vadd.f32 %v354_v13, %v245_v52  ;;  %v282_v57 = vadd.f32 %v281_v54, %v267_v53 }
  0xe9   :  { %v283_v59 = vadd.f32 %v282_v57, %v268_v55  ;;  %v247_v60 = vadd.f32 %v355_v17, %v246_v56 }
  0xeb   :  { %v248_v61 = vadd.f32 %v247_v60, %v201_v29  ;;  %v284_v63 = vadd.f32 %v283_v59, %v269_v58 }
  0xed   :  { %v285_v0 = vadd.f32 %v284_v63, %v270_v62  ;;  %v249_v1 = vadd.f32 %v248_v61, %v204_v39 }
  0xef   :  { %v250_v4 = vadd.f32 %v358_v24, %v249_v1  ;;  %v286_v5 = vadd.f32 %v285_v0, %v271_v2 }
  0xf1   :  { %v251_v7 = vadd.f32 %v359_v34, %v250_v4  ;;  %v287_v8 = vadd.f32 %v286_v5, %v272_v3 }
  0xf3   :  { %v252_v9 = vrot.slane %v251_v7, 4  ;;  %v288_v10 = vadd.f32 %v287_v8, %v273_v6 }
  0xf5   :  { %v253_v11 = vadd.f32 %v252_v9, %v251_v7  ;;  %v289_v12 = vrot.slane %v288_v10, 4 }
  0xf7   :  { %v254_v13 = vrot.slane %v253_v11, 2  ;;  %v290_v14 = vadd.f32 %v289_v12, %v288_v10 }
  0xf9   :  { %v255_v15 = vadd.f32 %v254_v13, %v253_v11  ;;  %v291_v16 = vrot.slane %v290_v14, 2 }
  0xfb   :  { %v256_v17 = vrot.slane %v255_v15, 1  ;;  %v292_v18 = vadd.f32 %v291_v16, %v290_v14 }
  0xfd   :  { %v293_v19 = vrot.slane %v292_v18, 1  ;;  %v257_v20 = vadd.f32 %v256_v17, %v255_v15 }
  0xff   :  { %v294_v21 = vadd.f32 %v293_v19, %v292_v18 }
 0x101   :  { %v297_v23 = vsel %vm296_vm1, %v257_v20, %v294_v21 }
 0x102   :  { %v298_v24 = vadd.f32 %v297_v23, %v295_v22 }
 0x104   :  { %299 = vst [vmem:[%s499_s3] sm:$0x3] %v298_v24 }

// kernel: unet_encoder_forward.27
= control target key start
LH: loop header
LB: loop body
LE: loop exit
PB: predicated region body
PF: predicated region fallthrough
CT: control target
= control target key end

     0   :  { %vm110_vm0 = vcmask 654336   ;;  %v408_v13 = vmov 0.0   ;;  %vm312_vm1 = vcmask 1040384   ;;  %s533_s1 = inlined_call_operand.vmem [shape: bf16[80,128], index: 1, kind: input, shape index: {}]   ;;  %s534_s0 = inlined_call_operand.vmem [shape: bf16[128,80], index: 0, kind: input, shape index: {}]   ;;  %s535_s3 = inlined_call_operand.vmem [shape: f32[2,128], index: 3, kind: output, shape index: {1}]   ;;  %s536_s2 = inlined_call_operand.vmem [shape: f32[128,128], index: 2, kind: output, shape index: {0}]  }
   0x1   :  { %v395_v0 = vld [vmem:[%s533_s1 + $0x20] sm:$0xff]   ;;  %v396_v1 = vld [vmem:[%s533_s1 + $0x18] sm:$0xff]   ;;  %v397_v2 = vld [vmem:[%s533_s1 + $0x10] sm:$0xff]   ;;  %252 = vst [vmem:[%s535_s3] sm:$0x3] %v408_v13 }
   0x2   :  { %358 = vmatprep.subr.bf16.mxu0 %v395_v0  ;;  %384 = vmatprep.subr.bf16.mxu1 %v395_v0  ;;  %v400_v3 = vld [vmem:[%s534_s0] sm:$0xff]   ;;  %v398_v4 = vld [vmem:[%s533_s1 + $0x8] sm:$0xff]   ;;  %v402_v9 = vld [vmem:[%s534_s0 + $0x10] sm:$0xff]  }
   0x3   :  { %359 = vmatpush3.bf16.msra.mxu0 %v395_v0  ;;  %389 = vmatpush3.bf16.msra.mxu1 %v395_v0  ;;  %v404_v5 = vld [vmem:[%s534_s0 + $0x20] sm:$0xff]   ;;  %v401_v7 = vld [vmem:[%s534_s0 + $0x8] sm:$0xff]   ;;  %v406_v10 = vld [vmem:[%s534_s0 + $0x30] sm:$0xff]  }
   0x4   :  { %360 = vmatprep.subr.bf16.mxu0 %v396_v1  ;;  %385 = vmatprep.subr.bf16.mxu1 %v396_v1  ;;  %v399_v6 = vld [vmem:[%s533_s1] sm:$0xff]   ;;  %v405_v8 = vld [vmem:[%s534_s0 + $0x28] sm:$0xff]   ;;  %v403_v11 = vld [vmem:[%s534_s0 + $0x18] sm:$0xff]  }
   0x5   :  { %368 = vmatprep.mubr.msk.bf16.mxu0 %vm110_vm0, %v400_v3  ;;  %376 = vmatprep.mubr.msk.bf16.mxu1 %vm110_vm0, %v404_v5  ;;  %v407_v12 = vld [vmem:[%s534_s0 + $0x38] sm:$0xff]  }
   0x7   :  { %361 = vmatpush3.bf16.msra.mxu0 %v396_v1  ;;  %390 = vmatpush3.bf16.msra.mxu1 %v396_v1 }
   0x8   :  { %362 = vmatprep.subr.bf16.mxu0 %v397_v2  ;;  %386 = vmatprep.subr.bf16.mxu1 %v397_v2 }
   0xb   :  { %363 = vmatpush3.bf16.msra.mxu0 %v397_v2  ;;  %391 = vmatpush3.bf16.msra.mxu1 %v397_v2 }
   0xc   :  { %364 = vmatprep.subr.bf16.mxu0 %v398_v4  ;;  %387 = vmatprep.subr.bf16.mxu1 %v398_v4 }
   0xf   :  { %365 = vmatpush3.bf16.msra.mxu0 %v398_v4  ;;  %392 = vmatpush3.bf16.msra.mxu1 %v398_v4 }
  0x10   :  { %366 = vmatprep.subr.bf16.mxu0 %v399_v6  ;;  %388 = vmatprep.subr.bf16.mxu1 %v399_v6 }
  0x13   :  { %367 = vmatpush3.bf16.msra.mxu0 %v399_v6  ;;  %393 = vmatpush3.bf16.msra.mxu1 %v399_v6 }
  0x16   :  { %369 = vmatmul.mubr.msk.bf16.vlgmr.msra.gmra.mxu0 %vm110_vm0, %v401_v7  ;;  %377 = vmatmul.mubr.msk.bf16.vlgmr.msra.gmra.mxu1 %vm110_vm0, %v405_v8 }
  0x17   :  { %372 = vmatprep.mubr.msk.bf16.mxu0 %vm110_vm0, %v402_v9  ;;  %380 = vmatprep.mubr.msk.bf16.mxu1 %vm110_vm0, %v406_v10 }
  0x1e   :  { %373 = vmatmul.mubr.msk.bf16.gmra.mxu0 %vm110_vm0, %v403_v11  ;;  %381 = vmatmul.mubr.msk.bf16.gmra.mxu1 %vm110_vm0, %v407_v12 }
  0xd6   :  { %v370_v14 = vpop.f32.mrf.mxu0  ;;  %v378_v15 = vpop.f32.mrf.mxu1 }
  0xd7   :  { %234 = vst [vmem:[%s536_s2 + $0x10] sm:$0xff] %v370_v14  ;;  %242 = vst [vmem:[%s536_s2 + $0x50] sm:$0xff] %v378_v15  ;;  %v276_v27 = vmul.f32 %v370_v14, %v370_v14  ;;  %v284_v57 = vmul.f32 %v378_v15, %v378_v15 }
  0xd8   :  { %v169_v16 = vpop.f32.mrf.mxu0  ;;  %v201_v17 = vpop.f32.mrf.mxu1 }
  0xd9   :  { %232 = vst [vmem:[%s536_s2] sm:$0xff] %v169_v16  ;;  %240 = vst [vmem:[%s536_s2 + $0x40] sm:$0xff] %v201_v17  ;;  %v274_v22 = vmul.f32 %v169_v16, %v169_v16  ;;  %v282_v51 = vmul.f32 %v201_v17, %v201_v17 }
  0xda   :  { %v371_v18 = vpop.f32.mrf.mxu0  ;;  %v379_v19 = vpop.f32.mrf.mxu1 }
  0xdb   :  { %235 = vst [vmem:[%s536_s2 + $0x18] sm:$0xff] %v371_v18  ;;  %243 = vst [vmem:[%s536_s2 + $0x58] sm:$0xff] %v379_v19  ;;  %v277_v32 = vmul.f32 %v371_v18, %v371_v18  ;;  %v285_v60 = vmul.f32 %v379_v19, %v379_v19 }
  0xdc   :  { %v172_v20 = vpop.f32.mrf.mxu0  ;;  %v204_v21 = vpop.f32.mrf.mxu1 }
  0xdd   :  { %233 = vst [vmem:[%s536_s2 + $0x8] sm:$0xff] %v172_v20  ;;  %v253_v23 = vadd.f32 %v172_v20, %v169_v16  ;;  %v275_v24 = vmul.f32 %v172_v20, %v172_v20  ;;  %241 = vst [vmem:[%s536_s2 + $0x48] sm:$0xff] %v204_v21  ;;  %v283_v55 = vmul.f32 %v204_v21, %v204_v21 }
  0xde   :  { %v374_v25 = vpop.f32.mrf.mxu0  ;;  %v382_v26 = vpop.f32.mrf.mxu1 }
  0xdf   :  { %v254_v28 = vadd.f32 %v370_v14, %v253_v23  ;;  %v290_v29 = vadd.f32 %v275_v24, %v274_v22  ;;  %238 = vst [vmem:[%s536_s2 + $0x30] sm:$0xff] %v374_v25  ;;  %246 = vst [vmem:[%s536_s2 + $0x70] sm:$0xff] %v382_v26  ;;  %v280_v45 = vmul.f32 %v374_v25, %v374_v25  ;;  %v311_v24 = vld [vmem:[%s535_s3] sm:$0x3] }
  0xe0   :  { %v185_v30 = vpop.f32.mrf.mxu0  ;;  %v217_v31 = vpop.f32.mrf.mxu1  ;;  %v288_v5 = vmul.f32 %v382_v26, %v382_v26 }
  0xe1   :  { %v291_v33 = vadd.f32 %v290_v29, %v276_v27  ;;  %236 = vst [vmem:[%s536_s2 + $0x20] sm:$0xff] %v185_v30  ;;  %v255_v34 = vadd.f32 %v371_v18, %v254_v28  ;;  %244 = vst [vmem:[%s536_s2 + $0x60] sm:$0xff] %v217_v31  ;;  %v278_v38 = vmul.f32 %v185_v30, %v185_v30 }
  0xe2   :  { %v375_v35 = vpop.f32.mrf.mxu0  ;;  %v383_v36 = vpop.f32.mrf.mxu1  ;;  %v286_v0 = vmul.f32 %v217_v31, %v217_v31 }
  0xe3   :  { %v256_v37 = vadd.f32 %v255_v34, %v185_v30  ;;  %v292_v39 = vadd.f32 %v291_v33, %v277_v32  ;;  %239 = vst [vmem:[%s536_s2 + $0x38] sm:$0xff] %v375_v35  ;;  %247 = vst [vmem:[%s536_s2 + $0x78] sm:$0xff] %v383_v36  ;;  %v281_v48 = vmul.f32 %v375_v35, %v375_v35 }
  0xe4   :  { %v188_v40 = vpop.f32.mrf.mxu0  ;;  %v220_v41 = vpop.f32.mrf.mxu1  ;;  %v289_v8 = vmul.f32 %v383_v36, %v383_v36 }
  0xe5   :  { %v293_v42 = vadd.f32 %v292_v39, %v278_v38  ;;  %237 = vst [vmem:[%s536_s2 + $0x28] sm:$0xff] %v188_v40  ;;  %v257_v43 = vadd.f32 %v256_v37, %v188_v40  ;;  %v279_v44 = vmul.f32 %v188_v40, %v188_v40  ;;  %245 = vst [vmem:[%s536_s2 + $0x68] sm:$0xff] %v220_v41 }
  0xe6   :  { %v287_v4 = vmul.f32 %v220_v41, %v220_v41 }
  0xe7   :  { %v258_v46 = vadd.f32 %v374_v25, %v257_v43  ;;  %v294_v47 = vadd.f32 %v293_v42, %v279_v44 }
  0xe9   :  { %v259_v49 = vadd.f32 %v375_v35, %v258_v46  ;;  %v295_v50 = vadd.f32 %v294_v47, %v280_v45 }
  0xeb   :  { %v296_v52 = vadd.f32 %v295_v50, %v281_v48  ;;  %v260_v53 = vadd.f32 %v259_v49, %v201_v17 }
  0xed   :  { %v261_v54 = vadd.f32 %v260_v53, %v204_v21  ;;  %v297_v56 = vadd.f32 %v296_v52, %v282_v51 }
  0xef   :  { %v262_v58 = vadd.f32 %v378_v15, %v261_v54  ;;  %v298_v59 = vadd.f32 %v297_v56, %v283_v55 }
  0xf1   :  { %v299_v61 = vadd.f32 %v298_v59, %v284_v57  ;;  %v263_v62 = vadd.f32 %v379_v19, %v262_v58 }
  0xf3   :  { %v264_v63 = vadd.f32 %v263_v62, %v217_v31  ;;  %v300_v1 = vadd.f32 %v299_v61, %v285_v60 }
  0xf5   :  { %v301_v2 = vadd.f32 %v300_v1, %v286_v0  ;;  %v265_v3 = vadd.f32 %v264_v63, %v220_v41 }
  0xf7   :  { %v266_v6 = vadd.f32 %v382_v26, %v265_v3  ;;  %v302_v7 = vadd.f32 %v301_v2, %v287_v4 }
  0xf9   :  { %v267_v9 = vadd.f32 %v383_v36, %v266_v6  ;;  %v303_v10 = vadd.f32 %v302_v7, %v288_v5 }
  0xfb   :  { %v268_v11 = vrot.slane %v267_v9, 4  ;;  %v304_v12 = vadd.f32 %v303_v10, %v289_v8 }
  0xfd   :  { %v269_v13 = vadd.f32 %v268_v11, %v267_v9  ;;  %v305_v14 = vrot.slane %v304_v12, 4 }
  0xff   :  { %v270_v15 = vrot.slane %v269_v13, 2  ;;  %v306_v16 = vadd.f32 %v305_v14, %v304_v12 }
 0x101   :  { %v271_v17 = vadd.f32 %v270_v15, %v269_v13  ;;  %v307_v18 = vrot.slane %v306_v16, 2 }
 0x103   :  { %v272_v19 = vrot.slane %v271_v17, 1  ;;  %v308_v20 = vadd.f32 %v307_v18, %v306_v16 }
 0x105   :  { %v309_v21 = vrot.slane %v308_v20, 1  ;;  %v273_v22 = vadd.f32 %v272_v19, %v271_v17 }
 0x107   :  { %v310_v23 = vadd.f32 %v309_v21, %v308_v20 }
 0x109   :  { %v313_v25 = vsel %vm312_vm1, %v273_v22, %v310_v23 }
 0x10a   :  { %v314_v26 = vadd.f32 %v313_v25, %v311_v24 }
 0x10c   :  { %315 = vst [vmem:[%s535_s3] sm:$0x3] %v314_v26 }

// kernel: unet_encoder_forward.31
= control target key start
LH: loop header
LB: loop body
LE: loop exit
PB: predicated region body
PF: predicated region fallthrough
CT: control target
= control target key end

     0   :  { %v474_v0 = vmov 0   ;;  %vm174_vm0 = vcmask 130048   ;;  %v475_v26 = vmov 0.0   ;;  %vm376_vm1 = vcmask 1040384   ;;  %s654_s1 = inlined_call_operand.vmem [shape: bf16[144,128], index: 1, kind: input, shape index: {}]   ;;  %s655_s0 = inlined_call_operand.vmem [shape: bf16[128,144], index: 0, kind: input, shape index: {}]   ;;  %s656_s3 = inlined_call_operand.vmem [shape: f32[2,128], index: 3, kind: output, shape index: {1}]   ;;  %s657_s2 = inlined_call_operand.vmem [shape: f32[128,128], index: 2, kind: output, shape index: {0}]  }
   0x1   :  { %199 = vmatprep.subr.bf16.mxu0 %v474_v0  ;;  %v441_v1 = vld [vmem:[%s654_s1 + $0x38] sm:$0xff]   ;;  %421 = vmatprep.subr.bf16.mxu1 %v474_v0  ;;  %v442_v2 = vld [vmem:[%s654_s1 + $0x30] sm:$0xff]   ;;  %v443_v3 = vld [vmem:[%s654_s1 + $0x28] sm:$0xff]   ;;  %316 = vst [vmem:[%s656_s3] sm:$0x3] %v475_v26 }
   0x2   :  { %200 = vmatpush1.bf16.msra.mxu0 %v441_v1  ;;  %430 = vmatpush1.bf16.msra.mxu1 %v441_v1  ;;  %v444_v4 = vld [vmem:[%s654_s1 + $0x20] sm:$0xff]   ;;  %v445_v7 = vld [vmem:[%s654_s1 + $0x18] sm:$0xff]   ;;  %v446_v8 = vld [vmem:[%s654_s1 + $0x10] sm:$0xff]  }
   0x3   :  { %201 = vmatprep.subr.bf16.mxu0 %v474_v0  ;;  %422 = vmatprep.subr.bf16.mxu1 %v474_v0  ;;  %v452_v5 = vld [vmem:[%s655_s0 + $0x4] ss:$8 sps:$4 sm:$0xff]   ;;  %v450_v12 = vld [vmem:[%s655_s0] ss:$8 sps:$4 sm:$0xff]   ;;  %v453_v14 = vld [vmem:[%s655_s0 + $0x14] ss:$8 sps:$4 sm:$0xff]  }
   0x4   :  { %413 = vmatprep.mubr.msk.bf16.mxu0 %vm174_vm0, %v452_v5  ;;  %v458_v6 = vld [vmem:[%s655_s0 + $0x44] ss:$8 sps:$4 sm:$0xff]   ;;  %v456_v13 = vld [vmem:[%s655_s0 + $0x40] ss:$8 sps:$4 sm:$0xff]   ;;  %v462_v15 = vld [vmem:[%s655_s0 + $0x54] ss:$8 sps:$4 sm:$0xff]  }
   0x5   :  { %417 = vmatprep.mubr.msk.bf16.mxu1 %vm174_vm0, %v458_v6  ;;  %v447_v9 = vld [vmem:[%s654_s1 + $0x8] sm:$0xff]   ;;  %v448_v10 = vld [vmem:[%s654_s1] sm:$0xff]   ;;  %v455_v16 = vld [vmem:[%s655_s0 + $0x10] ss:$8 sps:$4 sm:$0xff]  }
   0x6   :  { %202 = vmatpush1.bf16.msra.mxu0 %v442_v2  ;;  %431 = vmatpush1.bf16.msra.mxu1 %v442_v2  ;;  %v449_v11 = vld [vmem:[%s654_s1 + $0x40] sm:$0xff]   ;;  %v464_v17 = vld [vmem:[%s655_s0 + $0x50] ss:$8 sps:$4 sm:$0xff]   ;;  %v465_v22 = vld [vmem:[%s655_s0 + $0x34] ss:$8 sps:$4 sm:$0xff]  }
   0x7   :  { %203 = vmatprep.subr.bf16.mxu0 %v474_v0  ;;  %423 = vmatprep.subr.bf16.mxu1 %v474_v0  ;;  %v459_v18 = vld [vmem:[%s655_s0 + $0x24] ss:$8 sps:$4 sm:$0xff]   ;;  %v461_v20 = vld [vmem:[%s655_s0 + $0x20] ss:$8 sps:$4 sm:$0xff]   ;;  %v471_v23 = vld [vmem:[%s655_s0 + $0x74] ss:$8 sps:$4 sm:$0xff]  }
   0x8   :  { %v468_v19 = vld [vmem:[%s655_s0 + $0x64] ss:$8 sps:$4 sm:$0xff]   ;;  %v470_v21 = vld [vmem:[%s655_s0 + $0x60] ss:$8 sps:$4 sm:$0xff]   ;;  %v467_v24 = vld [vmem:[%s655_s0 + $0x30] ss:$8 sps:$4 sm:$0xff]  }
   0x9   :  { %v473_v25 = vld [vmem:[%s655_s0 + $0x70] ss:$8 sps:$4 sm:$0xff]  }
   0xa   :  { %204 = vmatpush1.bf16.msra.mxu0 %v443_v3  ;;  %432 = vmatpush1.bf16.msra.mxu1 %v443_v3 }
   0xb   :  { %205 = vmatprep.subr.bf16.mxu0 %v474_v0  ;;  %424 = vmatprep.subr.bf16.mxu1 %v474_v0 }
   0xe   :  { %206 = vmatpush1.bf16.msra.mxu0 %v444_v4  ;;  %433 = vmatpush1.bf16.msra.mxu1 %v444_v4 }
   0xf   :  { %207 = vmatprep.subr.bf16.mxu0 %v474_v0  ;;  %425 = vmatprep.subr.bf16.mxu1 %v474_v0 }
  0x12   :  { %208 = vmatpush1.bf16.msra.mxu0 %v445_v7  ;;  %434 = vmatpush1.bf16.msra.mxu1 %v445_v7 }
  0x13   :  { %209 = vmatprep.subr.bf16.mxu0 %v474_v0  ;;  %426 = vmatprep.subr.bf16.mxu1 %v474_v0 }
  0x16   :  { %210 = vmatpush1.bf16.msra.mxu0 %v446_v8  ;;  %435 = vmatpush1.bf16.msra.mxu1 %v446_v8 }
  0x17   :  { %211 = vmatprep.subr.bf16.mxu0 %v474_v0  ;;  %427 = vmatprep.subr.bf16.mxu1 %v474_v0 }
  0x1a   :  { %212 = vmatpush1.bf16.msra.mxu0 %v447_v9  ;;  %436 = vmatpush1.bf16.msra.mxu1 %v447_v9 }
  0x1b   :  { %213 = vmatprep.subr.bf16.mxu0 %v474_v0  ;;  %428 = vmatprep.subr.bf16.mxu1 %v474_v0 }
  0x1e   :  { %214 = vmatpush1.bf16.msra.mxu0 %v448_v10  ;;  %437 = vmatpush1.bf16.msra.mxu1 %v448_v10 }
  0x1f   :  { %229 = vmatprep.subr.bf16.mxu0 %v474_v0  ;;  %429 = vmatprep.subr.bf16.mxu1 %v474_v0 }
  0x22   :  { %230 = vmatpush2.bf16.msra.mxu0 %v449_v11  ;;  %438 = vmatpush2.bf16.msra.mxu1 %v449_v11 }
  0x25   :  { %232 = vmatmul.mubr.bf16.vlgmr.msra.gmra.mxu0 %v450_v12  ;;  %264 = vmatmul.mubr.bf16.vlgmr.msra.gmra.mxu1 %v456_v13 }
  0x26   :  { %414 = vmatprep.mubr.msk.bf16.mxu0 %vm174_vm0, %v453_v14  ;;  %418 = vmatprep.mubr.msk.bf16.mxu1 %vm174_vm0, %v462_v15 }
  0x2d   :  { %240 = vmatmul.mubr.bf16.gmra.mxu0 %v455_v16  ;;  %272 = vmatmul.mubr.bf16.gmra.mxu1 %v464_v17 }
  0x2e   :  { %415 = vmatprep.mubr.msk.bf16.mxu0 %vm174_vm0, %v459_v18  ;;  %419 = vmatprep.mubr.msk.bf16.mxu1 %vm174_vm0, %v468_v19 }
  0x35   :  { %248 = vmatmul.mubr.bf16.gmra.mxu0 %v461_v20  ;;  %280 = vmatmul.mubr.bf16.gmra.mxu1 %v470_v21 }
  0x36   :  { %416 = vmatprep.mubr.msk.bf16.mxu0 %vm174_vm0, %v465_v22  ;;  %420 = vmatprep.mubr.msk.bf16.mxu1 %vm174_vm0, %v471_v23 }
  0x3d   :  { %256 = vmatmul.mubr.bf16.gmra.mxu0 %v467_v24  ;;  %288 = vmatmul.mubr.bf16.gmra.mxu1 %v473_v25 }
  0xe5   :  { %v233_v27 = vpop.f32.mrf.mxu0  ;;  %v582_v28 = vpop.f32.mrf.mxu1 }
  0xe6   :  { %296 = vst [vmem:[%s657_s2] sm:$0xff] %v233_v27  ;;  %304 = vst [vmem:[%s657_s2 + $0x40] sm:$0xff] %v582_v28  ;;  %v338_v46 = vmul.f32 %v233_v27, %v233_v27  ;;  %v346_v16 = vmul.f32 %v582_v28, %v582_v28 }
  0xe7   :  { %v235_v29 = vpop.f32.mrf.mxu0  ;;  %v267_v30 = vpop.f32.mrf.mxu1 }
  0xe9   :  { %v236_v31 = vpop.f32.mrf.mxu0  ;;  %v591_v32 = vpop.f32.mrf.mxu1 }
  0xea   :  { %297 = vst [vmem:[%s657_s2 + $0x8] sm:$0xff] %v236_v31  ;;  %305 = vst [vmem:[%s657_s2 + $0x48] sm:$0xff] %v591_v32  ;;  %v339_v43 = vmul.f32 %v236_v31, %v236_v31  ;;  %v317_v47 = vadd.f32 %v236_v31, %v233_v27  ;;  %v347_v19 = vmul.f32 %v591_v32, %v591_v32 }
  0xeb   :  { %v238_v33 = vpop.f32.mrf.mxu0  ;;  %v270_v34 = vpop.f32.mrf.mxu1 }
  0xec   :  { %v354_v51 = vadd.f32 %v339_v43, %v338_v46 }
  0xed   :  { %v241_v35 = vpop.f32.mrf.mxu0  ;;  %v600_v36 = vpop.f32.mrf.mxu1 }
  0xee   :  { %298 = vst [vmem:[%s657_s2 + $0x10] sm:$0xff] %v241_v35  ;;  %306 = vst [vmem:[%s657_s2 + $0x50] sm:$0xff] %v600_v36  ;;  %v340_v48 = vmul.f32 %v241_v35, %v241_v35  ;;  %v318_v52 = vadd.f32 %v317_v47, %v241_v35  ;;  %v348_v22 = vmul.f32 %v600_v36, %v600_v36 }
  0xef   :  { %v243_v37 = vpop.f32.mrf.mxu0  ;;  %v275_v38 = vpop.f32.mrf.mxu1 }
  0xf0   :  { %v355_v56 = vadd.f32 %v354_v51, %v340_v48 }
  0xf1   :  { %v244_v39 = vpop.f32.mrf.mxu0  ;;  %v276_v40 = vpop.f32.mrf.mxu1 }
  0xf2   :  { %299 = vst [vmem:[%s657_s2 + $0x18] sm:$0xff] %v244_v39  ;;  %307 = vst [vmem:[%s657_s2 + $0x58] sm:$0xff] %v276_v40  ;;  %v341_v53 = vmul.f32 %v244_v39, %v244_v39  ;;  %v319_v57 = vadd.f32 %v318_v52, %v244_v39  ;;  %v349_v25 = vmul.f32 %v276_v40, %v276_v40 }
  0xf3   :  { %v246_v41 = vpop.f32.mrf.mxu0  ;;  %v278_v42 = vpop.f32.mrf.mxu1 }
  0xf4   :  { %v356_v61 = vadd.f32 %v355_v56, %v341_v53  ;;  %v375_v53 = vld [vmem:[%s656_s3] sm:$0x3] }
  0xf5   :  { %v249_v44 = vpop.f32.mrf.mxu0  ;;  %v281_v45 = vpop.f32.mrf.mxu1 }
  0xf6   :  { %300 = vst [vmem:[%s657_s2 + $0x20] sm:$0xff] %v249_v44  ;;  %308 = vst [vmem:[%s657_s2 + $0x60] sm:$0xff] %v281_v45  ;;  %v342_v58 = vmul.f32 %v249_v44, %v249_v44  ;;  %v320_v62 = vadd.f32 %v319_v57, %v249_v44  ;;  %v350_v29 = vmul.f32 %v281_v45, %v281_v45 }
  0xf7   :  { %v251_v49 = vpop.f32.mrf.mxu0  ;;  %v283_v50 = vpop.f32.mrf.mxu1 }
  0xf8   :  { %v357_v2 = vadd.f32 %v356_v61, %v342_v58 }
  0xf9   :  { %v252_v54 = vpop.f32.mrf.mxu0  ;;  %v284_v55 = vpop.f32.mrf.mxu1 }
  0xfa   :  { %301 = vst [vmem:[%s657_s2 + $0x28] sm:$0xff] %v252_v54  ;;  %309 = vst [vmem:[%s657_s2 + $0x68] sm:$0xff] %v284_v55  ;;  %v343_v63 = vmul.f32 %v252_v54, %v252_v54  ;;  %v321_v3 = vadd.f32 %v320_v62, %v252_v54  ;;  %v351_v33 = vmul.f32 %v284_v55, %v284_v55 }
  0xfb   :  { %v254_v59 = vpop.f32.mrf.mxu0  ;;  %v286_v60 = vpop.f32.mrf.mxu1 }
  0xfc   :  { %v358_v7 = vadd.f32 %v357_v2, %v343_v63 }
  0xfd   :  { %v257_v0 = vpop.f32.mrf.mxu0  ;;  %v289_v1 = vpop.f32.mrf.mxu1 }
  0xfe   :  { %302 = vst [vmem:[%s657_s2 + $0x30] sm:$0xff] %v257_v0  ;;  %v344_v4 = vmul.f32 %v257_v0, %v257_v0  ;;  %310 = vst [vmem:[%s657_s2 + $0x70] sm:$0xff] %v289_v1  ;;  %v322_v8 = vadd.f32 %v321_v3, %v257_v0  ;;  %v352_v38 = vmul.f32 %v289_v1, %v289_v1 }
  0xff   :  { %v259_v5 = vpop.f32.mrf.mxu0  ;;  %v291_v6 = vpop.f32.mrf.mxu1 }
 0x100   :  { %v359_v11 = vadd.f32 %v358_v7, %v344_v4 }
 0x101   :  { %v260_v9 = vpop.f32.mrf.mxu0  ;;  %v292_v10 = vpop.f32.mrf.mxu1 }
 0x102   :  { %303 = vst [vmem:[%s657_s2 + $0x38] sm:$0xff] %v260_v9  ;;  %v323_v12 = vadd.f32 %v322_v8, %v260_v9  ;;  %v345_v13 = vmul.f32 %v260_v9, %v260_v9  ;;  %311 = vst [vmem:[%s657_s2 + $0x78] sm:$0xff] %v292_v10  ;;  %v353_v41 = vmul.f32 %v292_v10, %v292_v10 }
 0x103   :  { %v262_v14 = vpop.f32.mrf.mxu0  ;;  %v294_v15 = vpop.f32.mrf.mxu1 }
 0x104   :  { %v324_v17 = vadd.f32 %v323_v12, %v582_v28  ;;  %v360_v18 = vadd.f32 %v359_v11, %v345_v13 }
 0x106   :  { %v325_v20 = vadd.f32 %v324_v17, %v591_v32  ;;  %v361_v21 = vadd.f32 %v360_v18, %v346_v16 }
 0x108   :  { %v362_v23 = vadd.f32 %v361_v21, %v347_v19  ;;  %v326_v24 = vadd.f32 %v325_v20, %v600_v36 }
 0x10a   :  { %v327_v26 = vadd.f32 %v326_v24, %v276_v40  ;;  %v363_v27 = vadd.f32 %v362_v23, %v348_v22 }
 0x10c   :  { %v328_v30 = vadd.f32 %v327_v26, %v281_v45  ;;  %v364_v31 = vadd.f32 %v363_v27, %v349_v25 }
 0x10e   :  { %v329_v28 = vadd.f32 %v328_v30, %v284_v55  ;;  %v365_v34 = vadd.f32 %v364_v31, %v350_v29 }
 0x110   :  { %v366_v35 = vadd.f32 %v365_v34, %v351_v33  ;;  %v330_v37 = vadd.f32 %v329_v28, %v289_v1 }
 0x112   :  { %v367_v32 = vadd.f32 %v366_v35, %v352_v38  ;;  %v331_v39 = vadd.f32 %v330_v37, %v292_v10 }
 0x114   :  { %v332_v42 = vrot.slane %v331_v39, 4  ;;  %v368_v43 = vadd.f32 %v367_v32, %v353_v41 }
 0x116   :  { %v333_v44 = vadd.f32 %v332_v42, %v331_v39  ;;  %v369_v46 = vrot.slane %v368_v43, 4 }
 0x118   :  { %v334_v36 = vrot.slane %v333_v44, 2  ;;  %v370_v47 = vadd.f32 %v369_v46, %v368_v43 }
 0x11a   :  { %v335_v40 = vadd.f32 %v334_v36, %v333_v44  ;;  %v371_v48 = vrot.slane %v370_v47, 2 }
 0x11c   :  { %v336_v49 = vrot.slane %v335_v40, 1  ;;  %v372_v45 = vadd.f32 %v371_v48, %v370_v47 }
 0x11e   :  { %v373_v50 = vrot.slane %v372_v45, 1  ;;  %v337_v51 = vadd.f32 %v336_v49, %v335_v40 }
 0x120   :  { %v374_v52 = vadd.f32 %v373_v50, %v372_v45 }
 0x122   :  { %v377_v54 = vsel %vm376_vm1, %v337_v51, %v374_v52 }
 0x123   :  { %v378_v55 = vadd.f32 %v377_v54, %v375_v53 }
 0x125   :  { %379 = vst [vmem:[%s656_s3] sm:$0x3] %v378_v55 }

// kernel: unet_encoder_forward.35
= control target key start
LH: loop header
LB: loop body
LE: loop exit
PB: predicated region body
PF: predicated region fallthrough
CT: control target
= control target key end

     0   :  { %vm310_vm0 = vcmask 261120   ;;  %v832_v42 = vmov 0.0   ;;  %vm609_vm1 = vcmask 1040384   ;;  %s1068_s1 = inlined_call_operand.vmem [shape: bf16[288,128], index: 1, kind: input, shape index: {}]   ;;  %s1069_s0 = inlined_call_operand.vmem [shape: bf16[128,288], index: 0, kind: input, shape index: {}]   ;;  %s1070_s3 = inlined_call_operand.vmem [shape: f32[2,128], index: 3, kind: output, shape index: {1}]   ;;  %s1071_s2 = inlined_call_operand.vmem [shape: f32[128,128], index: 2, kind: output, shape index: {0}]  }
   0x1   :  { %v782_v0 = vld [vmem:[%s1068_s1 + $0x78] sm:$0xff]   ;;  %v784_v2 = vld [vmem:[%s1068_s1 + $0x70] sm:$0xff]   ;;  %v786_v4 = vld [vmem:[%s1068_s1 + $0x68] sm:$0xff]   ;;  %549 = vst [vmem:[%s1070_s3] sm:$0x3] %v832_v42 }
   0x2   :  { %v783_v1 = vld [vmem:[%s1068_s1 + $0x38] sm:$0xff]   ;;  %671 = vmatprep.subr.bf16.mxu0 %v782_v0  ;;  %765 = vmatprep.subr.bf16.mxu1 %v782_v0  ;;  %v785_v3 = vld [vmem:[%s1068_s1 + $0x30] sm:$0xff]   ;;  %v787_v5 = vld [vmem:[%s1068_s1 + $0x28] sm:$0xff]  }
   0x3   :  { %672 = vmatpush3.bf16.msra.mxu0 %v783_v1  ;;  %773 = vmatpush3.bf16.msra.mxu1 %v783_v1  ;;  %v788_v6 = vld [vmem:[%s1068_s1 + $0x60] sm:$0xff]   ;;  %v790_v8 = vld [vmem:[%s1068_s1 + $0x58] sm:$0xff]   ;;  %v792_v10 = vld [vmem:[%s1068_s1 + $0x50] sm:$0xff]  }
   0x4   :  { %673 = vmatprep.subr.bf16.mxu0 %v784_v2  ;;  %766 = vmatprep.subr.bf16.mxu1 %v784_v2  ;;  %v789_v7 = vld [vmem:[%s1068_s1 + $0x20] sm:$0xff]   ;;  %v791_v9 = vld [vmem:[%s1068_s1 + $0x18] sm:$0xff]   ;;  %v793_v13 = vld [vmem:[%s1068_s1 + $0x10] sm:$0xff]  }
   0x5   :  { %v800_v11 = vld [vmem:[%s1069_s0 + $0x4] ss:$12 sps:$4 sm:$0xff]   ;;  %v803_v12 = vld [vmem:[%s1069_s0 + $0x94] ss:$12 sps:$4 sm:$0xff]   ;;  %v794_v14 = vld [vmem:[%s1068_s1 + $0x48] sm:$0xff]  }
   0x6   :  { %367 = vmatprep.mubr.bf16.mxu0 %v800_v11  ;;  %415 = vmatprep.mubr.bf16.mxu1 %v803_v12  ;;  %v795_v15 = vld [vmem:[%s1068_s1 + $0x8] sm:$0xff]   ;;  %v796_v16 = vld [vmem:[%s1068_s1 + $0x40] sm:$0xff]   ;;  %v801_v20 = vld [vmem:[%s1069_s0 + $0x90] ss:$12 sps:$4 sm:$0xff]  }
   0x7   :  { %674 = vmatpush3.bf16.msra.mxu0 %v785_v3  ;;  %774 = vmatpush3.bf16.msra.mxu1 %v785_v3  ;;  %v797_v17 = vld [vmem:[%s1068_s1] sm:$0xff]   ;;  %v804_v19 = vld [vmem:[%s1068_s1 + $0x88] sm:$0xff]   ;;  %v815_v28 = vld [vmem:[%s1069_s0 + $0x30] ss:$12 sps:$4 sm:$0xff]  }
   0x8   :  { %675 = vmatprep.subr.bf16.mxu0 %v786_v4  ;;  %767 = vmatprep.subr.bf16.mxu1 %v786_v4  ;;  %v798_v18 = vld [vmem:[%s1069_s0] ss:$12 sps:$4 sm:$0xff]   ;;  %v805_v21 = vld [vmem:[%s1069_s0 + $0x1c] ss:$12 sps:$4 sm:$0xff]   ;;  %v809_v24 = vld [vmem:[%s1069_s0 + $0x18] ss:$12 sps:$4 sm:$0xff]  }
   0x9   :  { %v807_v22 = vld [vmem:[%s1069_s0 + $0xac] ss:$12 sps:$4 sm:$0xff]   ;;  %v811_v23 = vld [vmem:[%s1068_s1 + $0x80] sm:$0xff]   ;;  %v810_v25 = vld [vmem:[%s1069_s0 + $0xa8] ss:$12 sps:$4 sm:$0xff]  }
   0xa   :  { %v812_v26 = vld [vmem:[%s1069_s0 + $0x34] ss:$12 sps:$4 sm:$0xff]   ;;  %v817_v30 = vld [vmem:[%s1069_s0 + $0x4c] ss:$12 sps:$4 sm:$0xff]   ;;  %v821_v33 = vld [vmem:[%s1069_s0 + $0x50] ss:$12 sps:$4 sm:$0xff]  }
   0xb   :  { %676 = vmatpush3.bf16.msra.mxu0 %v787_v5  ;;  %775 = vmatpush3.bf16.msra.mxu1 %v787_v5  ;;  %v814_v27 = vld [vmem:[%s1069_s0 + $0x8] ss:$12 sps:$4 sm:$0xff]   ;;  %v816_v29 = vld [vmem:[%s1069_s0 + $0x20] ss:$12 sps:$4 sm:$0xff]   ;;  %v819_v31 = vld [vmem:[%s1069_s0 + $0x38] ss:$12 sps:$4 sm:$0xff]  }
   0xc   :  { %677 = vmatprep.subr.bf16.mxu0 %v788_v6  ;;  %768 = vmatprep.subr.bf16.mxu1 %v788_v6  ;;  %v820_v32 = vld [vmem:[%s1069_s0 + $0x48] ss:$12 sps:$4 sm:$0xff]   ;;  %v822_v34 = vld [vmem:[%s1069_s0 + $0x64] ss:$12 sps:$4 sm:$0xff]   ;;  %v825_v36 = vld [vmem:[%s1069_s0 + $0x60] ss:$12 sps:$4 sm:$0xff]  }
   0xd   :  { %v824_v35 = vld [vmem:[%s1069_s0 + $0x68] ss:$12 sps:$4 sm:$0xff]   ;;  %v826_v37 = vld [vmem:[%s1069_s0 + $0x80] ss:$12 sps:$4 sm:$0xff]   ;;  %v829_v39 = vld [vmem:[%s1069_s0 + $0x98] ss:$12 sps:$4 sm:$0xff]  }
   0xe   :  { %v827_v38 = vld [vmem:[%s1069_s0 + $0x7c] ss:$12 sps:$4 sm:$0xff]   ;;  %v830_v40 = vld [vmem:[%s1069_s0 + $0x78] ss:$12 sps:$4 sm:$0xff]  }
   0xf   :  { %678 = vmatpush3.bf16.msra.mxu0 %v789_v7  ;;  %776 = vmatpush3.bf16.msra.mxu1 %v789_v7  ;;  %v831_v41 = vld [vmem:[%s1069_s0 + $0xb0] ss:$12 sps:$4 sm:$0xff]  }
  0x10   :  { %679 = vmatprep.subr.bf16.mxu0 %v790_v8  ;;  %769 = vmatprep.subr.bf16.mxu1 %v790_v8 }
  0x13   :  { %680 = vmatpush3.bf16.msra.mxu0 %v791_v9  ;;  %777 = vmatpush3.bf16.msra.mxu1 %v791_v9 }
  0x14   :  { %681 = vmatprep.subr.bf16.mxu0 %v792_v10  ;;  %770 = vmatprep.subr.bf16.mxu1 %v792_v10 }
  0x17   :  { %682 = vmatpush3.bf16.msra.mxu0 %v793_v13  ;;  %778 = vmatpush3.bf16.msra.mxu1 %v793_v13 }
  0x18   :  { %683 = vmatprep.subr.bf16.mxu0 %v794_v14  ;;  %771 = vmatprep.subr.bf16.mxu1 %v794_v14 }
  0x1b   :  { %684 = vmatpush3.bf16.msra.mxu0 %v795_v15  ;;  %779 = vmatpush3.bf16.msra.mxu1 %v795_v15 }
  0x1c   :  { %685 = vmatprep.subr.bf16.mxu0 %v796_v16  ;;  %772 = vmatprep.subr.bf16.mxu1 %v796_v16 }
  0x1f   :  { %686 = vmatpush3.bf16.msra.mxu0 %v797_v17  ;;  %780 = vmatpush3.bf16.msra.mxu1 %v797_v17 }
  0x20   :  { %745 = vmatprep.subr.bf16.mxu1 %v804_v19 }
  0x22   :  { %368 = vmatmul.mubr.bf16.vlgmr.msra.gmra.mxu0 %v798_v18  ;;  %416 = vmatmul.mubr.bf16.vlgmr.msra.gmra.mxu1 %v801_v20 }
  0x23   :  { %746 = vmatpush3.bf16.msra.mxu1 %v804_v19  ;;  %375 = vmatprep.mubr.bf16.mxu0 %v805_v21 }
  0x24   :  { %423 = vmatprep.mubr.bf16.mxu1 %v807_v22  ;;  %747 = vmatprep.subr.bf16.mxu1 %v811_v23 }
  0x27   :  { %748 = vmatpush3.bf16.msra.mxu1 %v811_v23 }
  0x2a   :  { %376 = vmatmul.mubr.bf16.gmra.mxu0 %v809_v24  ;;  %424 = vmatmul.mubr.bf16.gmra.mxu1 %v810_v25 }
  0x2b   :  { %383 = vmatprep.mubr.bf16.mxu0 %v812_v26  ;;  %749 = vmatprep.mubr.msk.bf16.mxu1 %vm310_vm0, %v814_v27 }
  0x32   :  { %384 = vmatmul.mubr.bf16.gmra.mxu0 %v815_v28  ;;  %750 = vmatmul.mubr.msk.bf16.vlgmr.msra.gmra.mxu1 %vm310_vm0, %v816_v29 }
  0x33   :  { %391 = vmatprep.mubr.bf16.mxu0 %v817_v30  ;;  %753 = vmatprep.mubr.msk.bf16.mxu1 %vm310_vm0, %v819_v31 }
  0x3a   :  { %392 = vmatmul.mubr.bf16.gmra.mxu0 %v820_v32  ;;  %754 = vmatmul.mubr.msk.bf16.gmra.mxu1 %vm310_vm0, %v821_v33 }
  0x3b   :  { %399 = vmatprep.mubr.bf16.mxu0 %v822_v34  ;;  %757 = vmatprep.mubr.msk.bf16.mxu1 %vm310_vm0, %v824_v35 }
  0x42   :  { %400 = vmatmul.mubr.bf16.gmra.mxu0 %v825_v36  ;;  %758 = vmatmul.mubr.msk.bf16.gmra.mxu1 %vm310_vm0, %v826_v37 }
  0x43   :  { %407 = vmatprep.mubr.bf16.mxu0 %v827_v38  ;;  %761 = vmatprep.mubr.msk.bf16.mxu1 %vm310_vm0, %v829_v39 }
  0x4a   :  { %408 = vmatmul.mubr.bf16.gmra.mxu0 %v830_v40  ;;  %762 = vmatmul.mubr.msk.bf16.gmra.mxu1 %vm310_vm0, %v831_v41 }
  0xe2   :  { %v687_v43 = vpop.f32.mrf.mxu0  ;;  %v990_v44 = vpop.f32.mrf.mxu1 }
  0xe4   :  { %v688_v45 = vpop.f32.mrf.mxu0  ;;  %v992_v46 = vpop.f32.mrf.mxu1 }
  0xe5   :  { %v689_v62 = vadd.f32 %v688_v45, %v687_v43 }
  0xe6   :  { %v690_v47 = vpop.f32.mrf.mxu0  ;;  %v994_v48 = vpop.f32.mrf.mxu1 }
  0xe8   :  { %v691_v49 = vpop.f32.mrf.mxu0  ;;  %v996_v50 = vpop.f32.mrf.mxu1 }
  0xe9   :  { %v692_v6 = vadd.f32 %v691_v49, %v690_v47 }
  0xea   :  { %v693_v51 = vpop.f32.mrf.mxu0  ;;  %v998_v52 = vpop.f32.mrf.mxu1 }
  0xec   :  { %v694_v53 = vpop.f32.mrf.mxu0  ;;  %v1000_v54 = vpop.f32.mrf.mxu1 }
  0xed   :  { %v695_v59 = vadd.f32 %v694_v53, %v693_v51 }
  0xee   :  { %v696_v55 = vpop.f32.mrf.mxu0  ;;  %v1002_v56 = vpop.f32.mrf.mxu1 }
  0xf0   :  { %v697_v57 = vpop.f32.mrf.mxu0  ;;  %v1004_v58 = vpop.f32.mrf.mxu1 }
  0xf1   :  { %v698_v2 = vadd.f32 %v697_v57, %v696_v55 }
  0xf2   :  { %v699_v60 = vpop.f32.mrf.mxu0  ;;  %v751_v61 = vpop.f32.mrf.mxu1 }
  0xf3   :  { %v475_v63 = vadd.f32 %v751_v61, %v695_v59 }
  0xf4   :  { %v700_v0 = vpop.f32.mrf.mxu0  ;;  %v466_v1 = vpop.f32.mrf.mxu1 }
  0xf5   :  { %531 = vst [vmem:[%s1071_s2 + $0x10] sm:$0xff] %v475_v63  ;;  %v467_v3 = vadd.f32 %v689_v62, %v466_v1  ;;  %v701_v13 = vadd.f32 %v700_v0, %v699_v60  ;;  %v573_v17 = vmul.f32 %v475_v63, %v475_v63 }
  0xf6   :  { %v702_v4 = vpop.f32.mrf.mxu0  ;;  %v752_v5 = vpop.f32.mrf.mxu1 }
  0xf7   :  { %529 = vst [vmem:[%s1071_s2] sm:$0xff] %v467_v3  ;;  %v478_v7 = vadd.f32 %v752_v5, %v698_v2  ;;  %v571_v14 = vmul.f32 %v467_v3, %v467_v3 }
  0xf8   :  { %v703_v8 = vpop.f32.mrf.mxu0  ;;  %v469_v9 = vpop.f32.mrf.mxu1 }
  0xf9   :  { %532 = vst [vmem:[%s1071_s2 + $0x18] sm:$0xff] %v478_v7  ;;  %v470_v10 = vadd.f32 %v692_v6, %v469_v9  ;;  %v574_v26 = vmul.f32 %v478_v7, %v478_v7  ;;  %v704_v30 = vadd.f32 %v703_v8, %v702_v4  ;;  %v725_v8 = vadd.f32 %v992_v46, %v990_v44 }
  0xfa   :  { %v705_v11 = vpop.f32.mrf.mxu0  ;;  %v755_v12 = vpop.f32.mrf.mxu1 }
  0xfb   :  { %530 = vst [vmem:[%s1071_s2 + $0x8] sm:$0xff] %v470_v10  ;;  %v550_v15 = vadd.f32 %v470_v10, %v467_v3  ;;  %v572_v16 = vmul.f32 %v470_v10, %v470_v10 }
  0xfc   :  { %v706_v18 = vpop.f32.mrf.mxu0  ;;  %v482_v19 = vpop.f32.mrf.mxu1 }
  0xfd   :  { %v551_v20 = vadd.f32 %v550_v15, %v475_v63  ;;  %v587_v21 = vadd.f32 %v572_v16, %v571_v14  ;;  %v707_v22 = vadd.f32 %v706_v18, %v705_v11  ;;  %v483_v23 = vadd.f32 %v701_v13, %v482_v19 }
  0xfe   :  { %v708_v24 = vpop.f32.mrf.mxu0  ;;  %v756_v25 = vpop.f32.mrf.mxu1  ;;  %v731_v63 = vadd.f32 %v1000_v54, %v998_v52  ;;  %v734_v52 = vadd.f32 %v1004_v58, %v1002_v56  ;;  %v728_v56 = vadd.f32 %v996_v50, %v994_v48 }
  0xff   :  { %v588_v27 = vadd.f32 %v587_v21, %v573_v17  ;;  %v491_v28 = vadd.f32 %v755_v12, %v707_v22  ;;  %533 = vst [vmem:[%s1071_s2 + $0x20] sm:$0xff] %v483_v23  ;;  %v552_v29 = vadd.f32 %v551_v20, %v478_v7  ;;  %v575_v34 = vmul.f32 %v483_v23, %v483_v23 }
 0x100   :  { %v709_v31 = vpop.f32.mrf.mxu0  ;;  %v485_v32 = vpop.f32.mrf.mxu1 }
 0x101   :  { %535 = vst [vmem:[%s1071_s2 + $0x30] sm:$0xff] %v491_v28  ;;  %v553_v33 = vadd.f32 %v552_v29, %v483_v23  ;;  %v589_v35 = vadd.f32 %v588_v27, %v574_v26  ;;  %v710_v36 = vadd.f32 %v709_v31, %v708_v24  ;;  %v486_v37 = vadd.f32 %v704_v30, %v485_v32 }
 0x102   :  { %v711_v38 = vpop.f32.mrf.mxu0  ;;  %v759_v39 = vpop.f32.mrf.mxu1  ;;  %v577_v57 = vmul.f32 %v491_v28, %v491_v28 }
 0x103   :  { %v590_v40 = vadd.f32 %v589_v35, %v575_v34  ;;  %v494_v41 = vadd.f32 %v756_v25, %v710_v36  ;;  %534 = vst [vmem:[%s1071_s2 + $0x28] sm:$0xff] %v486_v37  ;;  %v554_v42 = vadd.f32 %v553_v33, %v486_v37  ;;  %v576_v43 = vmul.f32 %v486_v37, %v486_v37 }
 0x104   :  { %v712_v45 = vpop.f32.mrf.mxu0  ;;  %v498_v47 = vpop.f32.mrf.mxu1 }
 0x105   :  { %536 = vst [vmem:[%s1071_s2 + $0x38] sm:$0xff] %v494_v41  ;;  %v713_v49 = vadd.f32 %v712_v45, %v711_v38  ;;  %v591_v51 = vadd.f32 %v590_v40, %v576_v43  ;;  %v555_v59 = vadd.f32 %v554_v42, %v491_v28  ;;  %v578_v4 = vmul.f32 %v494_v41, %v494_v41 }
 0x106   :  { %v714_v53 = vpop.f32.mrf.mxu0  ;;  %v760_v55 = vpop.f32.mrf.mxu1 }
 0x107   :  { %v499_v60 = vadd.f32 %v713_v49, %v498_v47  ;;  %v592_v0 = vadd.f32 %v591_v51, %v577_v57  ;;  %v556_v5 = vadd.f32 %v555_v59, %v494_v41 }
 0x108   :  { %v715_v61 = vpop.f32.mrf.mxu0  ;;  %v501_v62 = vpop.f32.mrf.mxu1 }
 0x109   :  { %537 = vst [vmem:[%s1071_s2 + $0x40] sm:$0xff] %v499_v60  ;;  %v716_v1 = vadd.f32 %v715_v61, %v714_v53  ;;  %v579_v54 = vmul.f32 %v499_v60, %v499_v60  ;;  %v593_v11 = vadd.f32 %v592_v0, %v578_v4  ;;  %v557_v44 = vadd.f32 %v556_v5, %v499_v60  ;;  %v608_v61 = vld [vmem:[%s1070_s3] sm:$0x3] }
 0x10a   :  { %v717_v2 = vpop.f32.mrf.mxu0  ;;  %v763_v3 = vpop.f32.mrf.mxu1 }
 0x10b   :  { %v502_v6 = vadd.f32 %v716_v1, %v501_v62  ;;  %v523_v7 = vadd.f32 %v763_v3, %v731_v63  ;;  %v594_v19 = vadd.f32 %v593_v11, %v579_v54 }
 0x10c   :  { %v718_v9 = vpop.f32.mrf.mxu0  ;;  %v514_v10 = vpop.f32.mrf.mxu1 }
 0x10d   :  { %538 = vst [vmem:[%s1071_s2 + $0x48] sm:$0xff] %v502_v6  ;;  %543 = vst [vmem:[%s1071_s2 + $0x70] sm:$0xff] %v523_v7  ;;  %v719_v12 = vadd.f32 %v718_v9, %v717_v2  ;;  %v515_v13 = vadd.f32 %v725_v8, %v514_v10  ;;  %v580_v46 = vmul.f32 %v502_v6, %v502_v6 }
 0x10e   :  { %v720_v14 = vpop.f32.mrf.mxu0  ;;  %v764_v15 = vpop.f32.mrf.mxu1  ;;  %v558_v20 = vadd.f32 %v557_v44, %v502_v6  ;;  %v585_v34 = vmul.f32 %v523_v7, %v523_v7 }
 0x10f   :  { %v507_v16 = vadd.f32 %v759_v39, %v719_v12  ;;  %v526_v17 = vadd.f32 %v764_v15, %v734_v52  ;;  %541 = vst [vmem:[%s1071_s2 + $0x60] sm:$0xff] %v515_v13  ;;  %v595_v48 = vadd.f32 %v594_v19, %v580_v46  ;;  %v583_v28 = vmul.f32 %v515_v13, %v515_v13 }
 0x110   :  { %v721_v58 = vpop.f32.mrf.mxu0  ;;  %v517_v18 = vpop.f32.mrf.mxu1 }
 0x111   :  { %539 = vst [vmem:[%s1071_s2 + $0x50] sm:$0xff] %v507_v16  ;;  %v581_v21 = vmul.f32 %v507_v16, %v507_v16  ;;  %544 = vst [vmem:[%s1071_s2 + $0x78] sm:$0xff] %v526_v17  ;;  %v722_v22 = vadd.f32 %v721_v58, %v720_v14  ;;  %v518_v23 = vadd.f32 %v728_v56, %v517_v18 }
 0x112   :  { %v559_v50 = vadd.f32 %v558_v20, %v507_v16  ;;  %v586_v37 = vmul.f32 %v526_v17, %v526_v17 }
 0x113   :  { %v510_v24 = vadd.f32 %v760_v55, %v722_v22  ;;  %542 = vst [vmem:[%s1071_s2 + $0x68] sm:$0xff] %v518_v23  ;;  %v596_v25 = vadd.f32 %v595_v48, %v581_v21  ;;  %v584_v32 = vmul.f32 %v518_v23, %v518_v23 }
 0x115   :  { %540 = vst [vmem:[%s1071_s2 + $0x58] sm:$0xff] %v510_v24  ;;  %v560_v26 = vadd.f32 %v559_v50, %v510_v24  ;;  %v582_v27 = vmul.f32 %v510_v24, %v510_v24 }
 0x117   :  { %v597_v29 = vadd.f32 %v596_v25, %v582_v27  ;;  %v561_v30 = vadd.f32 %v560_v26, %v515_v13 }
 0x119   :  { %v562_v31 = vadd.f32 %v561_v30, %v518_v23  ;;  %v598_v33 = vadd.f32 %v597_v29, %v583_v28 }
 0x11b   :  { %v563_v35 = vadd.f32 %v562_v31, %v523_v7  ;;  %v599_v36 = vadd.f32 %v598_v33, %v584_v32 }
 0x11d   :  { %v564_v38 = vadd.f32 %v563_v35, %v526_v17  ;;  %v600_v39 = vadd.f32 %v599_v36, %v585_v34 }
 0x11f   :  { %v565_v40 = vrot.slane %v564_v38, 4  ;;  %v601_v41 = vadd.f32 %v600_v39, %v586_v37 }
 0x121   :  { %v566_v42 = vadd.f32 %v565_v40, %v564_v38  ;;  %v602_v43 = vrot.slane %v601_v41, 4 }
 0x123   :  { %v567_v45 = vrot.slane %v566_v42, 2  ;;  %v603_v47 = vadd.f32 %v602_v43, %v601_v41 }
 0x125   :  { %v568_v49 = vadd.f32 %v567_v45, %v566_v42  ;;  %v604_v51 = vrot.slane %v603_v47, 2 }
 0x127   :  { %v569_v53 = vrot.slane %v568_v49, 1  ;;  %v605_v55 = vadd.f32 %v604_v51, %v603_v47 }
 0x129   :  { %v606_v57 = vrot.slane %v605_v55, 1  ;;  %v570_v59 = vadd.f32 %v569_v53, %v568_v49 }
 0x12b   :  { %v607_v60 = vadd.f32 %v606_v57, %v605_v55 }
 0x12d   :  { %v610_v62 = vsel %vm609_vm1, %v570_v59, %v607_v60 }
 0x12e   :  { %v611_v63 = vadd.f32 %v610_v62, %v608_v61 }
 0x130   :  { %612 = vst [vmem:[%s1070_s3] sm:$0x3] %v611_v63 }

// kernel: unet_encoder_forward.41
= control target key start
LH: loop header
LB: loop body
LE: loop exit
PB: predicated region body
PF: predicated region fallthrough
CT: control target
= control target key end

     0   :  { %s483_s1 = inlined_call_operand.vmem [shape: bf16[128,128], index: 1, kind: input, shape index: {}]   ;;  %s484_s0 = inlined_call_operand.vmem [shape: bf16[128,128], index: 0, kind: input, shape index: {}]   ;;  %s485_s2 = inlined_call_operand.vmem [shape: f32[1,128], index: 2, kind: input, shape index: {}]   ;;  %s486_s3 = inlined_call_operand.vmem [shape: f32[128,128], index: 3, kind: output, shape index: {}]  }
   0x1   :  { %v348_v0 = vld [vmem:[%s483_s1 + $0x38] sm:$0xff]   ;;  %v349_v1 = vld [vmem:[%s483_s1 + $0x30] sm:$0xff]   ;;  %v350_v2 = vld [vmem:[%s483_s1 + $0x28] sm:$0xff]  }
   0x2   :  { %300 = vmatprep.subr.bf16.mxu0 %v348_v0  ;;  %332 = vmatprep.subr.bf16.mxu1 %v348_v0  ;;  %v351_v3 = vld [vmem:[%s483_s1 + $0x20] sm:$0xff]   ;;  %v352_v6 = vld [vmem:[%s483_s1 + $0x18] sm:$0xff]   ;;  %v353_v7 = vld [vmem:[%s483_s1 + $0x10] sm:$0xff]  }
   0x3   :  { %301 = vmatpush3.bf16.msra.mxu0 %v348_v0  ;;  %340 = vmatpush3.bf16.msra.mxu1 %v348_v0  ;;  %v356_v4 = vld [vmem:[%s484_s0] sm:$0xff]   ;;  %v354_v8 = vld [vmem:[%s483_s1 + $0x8] sm:$0xff]   ;;  %v360_v12 = vld [vmem:[%s484_s0 + $0x10] sm:$0xff]  }
   0x4   :  { %302 = vmatprep.subr.bf16.mxu0 %v349_v1  ;;  %333 = vmatprep.subr.bf16.mxu1 %v349_v1  ;;  %v357_v5 = vld [vmem:[%s484_s0 + $0x20] sm:$0xff]   ;;  %v358_v10 = vld [vmem:[%s484_s0 + $0x8] sm:$0xff]   ;;  %v361_v13 = vld [vmem:[%s484_s0 + $0x30] sm:$0xff]  }
   0x5   :  { %316 = vmatprep.mubr.bf16.mxu0 %v356_v4  ;;  %324 = vmatprep.mubr.bf16.mxu1 %v357_v5  ;;  %v355_v9 = vld [vmem:[%s483_s1] sm:$0xff]   ;;  %v359_v11 = vld [vmem:[%s484_s0 + $0x28] sm:$0xff]   ;;  %v362_v14 = vld [vmem:[%s484_s0 + $0x18] sm:$0xff]  }
   0x6   :  { %v363_v15 = vld [vmem:[%s484_s0 + $0x38] sm:$0xff]   ;;  %v267_v16 = vld [vmem:[%s485_s2] ss:$0 sm:$0xff] }
   0x7   :  { %303 = vmatpush3.bf16.msra.mxu0 %v349_v1  ;;  %341 = vmatpush3.bf16.msra.mxu1 %v349_v1 }
   0x8   :  { %304 = vmatprep.subr.bf16.mxu0 %v350_v2  ;;  %334 = vmatprep.subr.bf16.mxu1 %v350_v2 }
   0xb   :  { %305 = vmatpush3.bf16.msra.mxu0 %v350_v2  ;;  %342 = vmatpush3.bf16.msra.mxu1 %v350_v2 }
   0xc   :  { %306 = vmatprep.subr.bf16.mxu0 %v351_v3  ;;  %335 = vmatprep.subr.bf16.mxu1 %v351_v3 }
   0xf   :  { %307 = vmatpush3.bf16.msra.mxu0 %v351_v3  ;;  %343 = vmatpush3.bf16.msra.mxu1 %v351_v3 }
  0x10   :  { %308 = vmatprep.subr.bf16.mxu0 %v352_v6  ;;  %336 = vmatprep.subr.bf16.mxu1 %v352_v6 }
  0x13   :  { %309 = vmatpush3.bf16.msra.mxu0 %v352_v6  ;;  %344 = vmatpush3.bf16.msra.mxu1 %v352_v6 }
  0x14   :  { %310 = vmatprep.subr.bf16.mxu0 %v353_v7  ;;  %337 = vmatprep.subr.bf16.mxu1 %v353_v7 }
  0x17   :  { %311 = vmatpush3.bf16.msra.mxu0 %v353_v7  ;;  %345 = vmatpush3.bf16.msra.mxu1 %v353_v7 }
  0x18   :  { %312 = vmatprep.subr.bf16.mxu0 %v354_v8  ;;  %338 = vmatprep.subr.bf16.mxu1 %v354_v8 }
  0x1b   :  { %313 = vmatpush3.bf16.msra.mxu0 %v354_v8  ;;  %346 = vmatpush3.bf16.msra.mxu1 %v354_v8 }
  0x1c   :  { %314 = vmatprep.subr.bf16.mxu0 %v355_v9  ;;  %339 = vmatprep.subr.bf16.mxu1 %v355_v9 }
  0x1f   :  { %315 = vmatpush3.bf16.msra.mxu0 %v355_v9  ;;  %347 = vmatpush3.bf16.msra.mxu1 %v355_v9 }
  0x22   :  { %317 = vmatmul.mubr.bf16.vlgmr.msra.gmra.mxu0 %v358_v10  ;;  %325 = vmatmul.mubr.bf16.vlgmr.msra.gmra.mxu1 %v359_v11 }
  0x23   :  { %320 = vmatprep.mubr.bf16.mxu0 %v360_v12  ;;  %328 = vmatprep.mubr.bf16.mxu1 %v361_v13 }
  0x2a   :  { %321 = vmatmul.mubr.bf16.gmra.mxu0 %v362_v14  ;;  %329 = vmatmul.mubr.bf16.gmra.mxu1 %v363_v15 }
  0xe2   :  { %v318_v17 = vpop.f32.mrf.mxu0  ;;  %v326_v18 = vpop.f32.mrf.mxu1 }
  0xe3   :  { %v193_v19 = vadd.f32 %v318_v17, %v267_v16  ;;  %v225_v20 = vadd.f32 %v326_v18, %v267_v16 }
  0xe4   :  { %v184_v21 = vpop.f32.mrf.mxu0  ;;  %v216_v22 = vpop.f32.mrf.mxu1 }
  0xe5   :  { %249 = vst [vmem:[%s486_s3 + $0x10] sm:$0xff] %v193_v19  ;;  %257 = vst [vmem:[%s486_s3 + $0x50] sm:$0xff] %v225_v20  ;;  %v185_v23 = vadd.f32 %v267_v16, %v184_v21  ;;  %v217_v24 = vadd.f32 %v267_v16, %v216_v22 }
  0xe6   :  { %v319_v25 = vpop.f32.mrf.mxu0  ;;  %v327_v26 = vpop.f32.mrf.mxu1 }
  0xe7   :  { %247 = vst [vmem:[%s486_s3] sm:$0xff] %v185_v23  ;;  %255 = vst [vmem:[%s486_s3 + $0x40] sm:$0xff] %v217_v24  ;;  %v196_v27 = vadd.f32 %v319_v25, %v267_v16  ;;  %v228_v28 = vadd.f32 %v327_v26, %v267_v16 }
  0xe8   :  { %v187_v29 = vpop.f32.mrf.mxu0  ;;  %v219_v30 = vpop.f32.mrf.mxu1 }
  0xe9   :  { %250 = vst [vmem:[%s486_s3 + $0x18] sm:$0xff] %v196_v27  ;;  %258 = vst [vmem:[%s486_s3 + $0x58] sm:$0xff] %v228_v28  ;;  %v188_v31 = vadd.f32 %v267_v16, %v187_v29  ;;  %v220_v32 = vadd.f32 %v267_v16, %v219_v30 }
  0xea   :  { %v322_v33 = vpop.f32.mrf.mxu0  ;;  %v330_v34 = vpop.f32.mrf.mxu1 }
  0xeb   :  { %248 = vst [vmem:[%s486_s3 + $0x8] sm:$0xff] %v188_v31  ;;  %256 = vst [vmem:[%s486_s3 + $0x48] sm:$0xff] %v220_v32  ;;  %v209_v35 = vadd.f32 %v322_v33, %v267_v16  ;;  %v241_v36 = vadd.f32 %v330_v34, %v267_v16 }
  0xec   :  { %v200_v37 = vpop.f32.mrf.mxu0  ;;  %v232_v38 = vpop.f32.mrf.mxu1 }
  0xed   :  { %253 = vst [vmem:[%s486_s3 + $0x30] sm:$0xff] %v209_v35  ;;  %261 = vst [vmem:[%s486_s3 + $0x70] sm:$0xff] %v241_v36  ;;  %v201_v39 = vadd.f32 %v267_v16, %v200_v37  ;;  %v233_v40 = vadd.f32 %v267_v16, %v232_v38 }
  0xee   :  { %v323_v41 = vpop.f32.mrf.mxu0  ;;  %v331_v42 = vpop.f32.mrf.mxu1 }
  0xef   :  { %251 = vst [vmem:[%s486_s3 + $0x20] sm:$0xff] %v201_v39  ;;  %259 = vst [vmem:[%s486_s3 + $0x60] sm:$0xff] %v233_v40  ;;  %v212_v43 = vadd.f32 %v323_v41, %v267_v16  ;;  %v244_v44 = vadd.f32 %v331_v42, %v267_v16 }
  0xf0   :  { %v203_v45 = vpop.f32.mrf.mxu0  ;;  %v235_v46 = vpop.f32.mrf.mxu1 }
  0xf1   :  { %254 = vst [vmem:[%s486_s3 + $0x38] sm:$0xff] %v212_v43  ;;  %262 = vst [vmem:[%s486_s3 + $0x78] sm:$0xff] %v244_v44  ;;  %v204_v47 = vadd.f32 %v267_v16, %v203_v45  ;;  %v236_v48 = vadd.f32 %v267_v16, %v235_v46 }
  0xf3   :  { %252 = vst [vmem:[%s486_s3 + $0x28] sm:$0xff] %v204_v47  ;;  %260 = vst [vmem:[%s486_s3 + $0x68] sm:$0xff] %v236_v48 }

// kernel: unet_encoder_forward.39
= control target key start
LH: loop header
LB: loop body
LE: loop exit
PB: predicated region body
PF: predicated region fallthrough
CT: control target
= control target key end

     0   :  { %vm550_vm0 = vcmask 523264   ;;  %vm946_vm1 = vcmask 1040384   ;;  %s1711_s1 = inlined_call_operand.vmem [shape: bf16[576,128], index: 1, kind: input, shape index: {}]   ;;  %s1712_s0 = inlined_call_operand.vmem [shape: bf16[128,576], index: 0, kind: input, shape index: {}]   ;;  %s1713_s3 = inlined_call_operand.vmem [shape: f32[2,128], index: 3, kind: output, shape index: {1}]   ;;  %s1714_s2 = inlined_call_operand.vmem [shape: f32[128,128], index: 2, kind: output, shape index: {0}]  }
   0x1   :  { %v1215_v0 = vld [vmem:[%s1711_s1 + $0x78] sm:$0xff]   ;;  %v1219_v4 = vld [vmem:[%s1711_s1 + $0x70] sm:$0xff]   ;;  %v1223_v8 = vld [vmem:[%s1711_s1 + $0x68] sm:$0xff]  }
   0x2   :  { %v1216_v1 = vld [vmem:[%s1711_s1 + $0xf8] sm:$0xff]   ;;  %1042 = vmatprep.subr.bf16.mxu0 %v1215_v0  ;;  %v1220_v5 = vld [vmem:[%s1711_s1 + $0xf0] sm:$0xff]   ;;  %v1224_v9 = vld [vmem:[%s1711_s1 + $0xe8] sm:$0xff]  }
   0x3   :  { %v1217_v2 = vld [vmem:[%s1711_s1 + $0x38] sm:$0xff]   ;;  %1106 = vmatprep.subr.bf16.mxu1 %v1216_v1  ;;  %v1221_v6 = vld [vmem:[%s1711_s1 + $0x30] sm:$0xff]   ;;  %v1225_v10 = vld [vmem:[%s1711_s1 + $0x28] sm:$0xff]  }
   0x4   :  { %v1218_v3 = vld [vmem:[%s1711_s1 + $0xb8] sm:$0xff]   ;;  %1043 = vmatpush3.bf16.msra.mxu0 %v1217_v2  ;;  %v1222_v7 = vld [vmem:[%s1711_s1 + $0xb0] sm:$0xff]   ;;  %v1226_v11 = vld [vmem:[%s1711_s1 + $0xa8] sm:$0xff]  }
   0x5   :  { %1107 = vmatpush3.bf16.msra.mxu1 %v1218_v3  ;;  %1044 = vmatprep.subr.bf16.mxu0 %v1219_v4  ;;  %v1227_v12 = vld [vmem:[%s1711_s1 + $0x60] sm:$0xff]   ;;  %v1231_v16 = vld [vmem:[%s1711_s1 + $0x58] sm:$0xff]   ;;  %v1235_v20 = vld [vmem:[%s1711_s1 + $0x50] sm:$0xff]  }
   0x6   :  { %1108 = vmatprep.subr.bf16.mxu1 %v1220_v5  ;;  %v1228_v13 = vld [vmem:[%s1711_s1 + $0xe0] sm:$0xff]   ;;  %v1232_v17 = vld [vmem:[%s1711_s1 + $0xd8] sm:$0xff]   ;;  %v1236_v21 = vld [vmem:[%s1711_s1 + $0xd0] sm:$0xff]  }
   0x7   :  { %v1229_v14 = vld [vmem:[%s1711_s1 + $0x20] sm:$0xff]   ;;  %v1233_v18 = vld [vmem:[%s1711_s1 + $0x18] sm:$0xff]   ;;  %v1237_v22 = vld [vmem:[%s1711_s1 + $0x10] sm:$0xff]  }
   0x8   :  { %1045 = vmatpush3.bf16.msra.mxu0 %v1221_v6  ;;  %v1230_v15 = vld [vmem:[%s1711_s1 + $0xa0] sm:$0xff]   ;;  %v1234_v19 = vld [vmem:[%s1711_s1 + $0x98] sm:$0xff]   ;;  %v1238_v23 = vld [vmem:[%s1711_s1 + $0x90] sm:$0xff]  }
   0x9   :  { %1109 = vmatpush3.bf16.msra.mxu1 %v1222_v7  ;;  %1046 = vmatprep.subr.bf16.mxu0 %v1223_v8  ;;  %v1239_v24 = vld [vmem:[%s1711_s1 + $0x48] sm:$0xff]   ;;  %v1243_v28 = vld [vmem:[%s1711_s1 + $0x40] sm:$0xff]   ;;  %v1253_v36 = vld [vmem:[%s1711_s1 + $0x118] sm:$0xff]  }
   0xa   :  { %1110 = vmatprep.subr.bf16.mxu1 %v1224_v9  ;;  %v1240_v25 = vld [vmem:[%s1711_s1 + $0xc8] sm:$0xff]   ;;  %v1244_v29 = vld [vmem:[%s1711_s1 + $0xc0] sm:$0xff]   ;;  %v1266_v42 = vld [vmem:[%s1711_s1 + $0x110] sm:$0xff]  }
   0xb   :  { %v1241_v26 = vld [vmem:[%s1711_s1 + $0x8] sm:$0xff]   ;;  %v1245_v30 = vld [vmem:[%s1711_s1] sm:$0xff]   ;;  %v1262_v43 = vld [vmem:[%s1712_s0 + $0x5c] ss:$20 sps:$4 sm:$0xff]  }
   0xc   :  { %1047 = vmatpush3.bf16.msra.mxu0 %v1225_v10  ;;  %v1242_v27 = vld [vmem:[%s1711_s1 + $0x88] sm:$0xff]   ;;  %v1246_v31 = vld [vmem:[%s1711_s1 + $0x80] sm:$0xff]   ;;  %v1267_v47 = vld [vmem:[%s1712_s0 + $0x7c] ss:$20 sps:$4 sm:$0xff]  }
   0xd   :  { %1111 = vmatpush3.bf16.msra.mxu1 %v1226_v11  ;;  %1048 = vmatprep.subr.bf16.mxu0 %v1227_v12  ;;  %v1247_v32 = vld [vmem:[%s1712_s0] ss:$20 sps:$4 sm:$0xff]   ;;  %v1249_v33 = vld [vmem:[%s1712_s0 + $0x4] ss:$20 sps:$4 sm:$0xff]   ;;  %v1250_v34 = vld [vmem:[%s1712_s0 + $0x8] ss:$20 sps:$4 sm:$0xff]  }
   0xe   :  { %1112 = vmatprep.subr.bf16.mxu1 %v1228_v13  ;;  %v1252_v35 = vld [vmem:[%s1712_s0 + $0xc] ss:$20 sps:$4 sm:$0xff]   ;;  %607 = vmatprep.mubr.bf16.mxu0 %v1249_v33  ;;  %v1256_v38 = vld [vmem:[%s1712_s0 + $0x34] ss:$20 sps:$4 sm:$0xff]   ;;  %v1259_v40 = vld [vmem:[%s1712_s0 + $0x30] ss:$20 sps:$4 sm:$0xff]  }
   0xf   :  { %704 = vmatprep.mubr.bf16.mxu1 %v1252_v35  ;;  %v1254_v37 = vld [vmem:[%s1712_s0 + $0x2c] ss:$20 sps:$4 sm:$0xff]   ;;  %v1258_v39 = vld [vmem:[%s1712_s0 + $0x28] ss:$20 sps:$4 sm:$0xff]   ;;  %v1264_v44 = vld [vmem:[%s1712_s0 + $0x50] ss:$20 sps:$4 sm:$0xff]  }
  0x10   :  { %1049 = vmatpush3.bf16.msra.mxu0 %v1229_v14  ;;  %v1260_v41 = vld [vmem:[%s1712_s0 + $0x54] ss:$20 sps:$4 sm:$0xff]   ;;  %v1265_v45 = vld [vmem:[%s1712_s0 + $0x58] ss:$20 sps:$4 sm:$0xff]   ;;  %v1292_v49 = vld [vmem:[%s1711_s1 + $0x100] sm:$0xff]   ;;  %v1307_v12 = vmov 0.0  }
  0x11   :  { %1113 = vmatpush3.bf16.msra.mxu1 %v1230_v15  ;;  %1050 = vmatprep.subr.bf16.mxu0 %v1231_v16  ;;  %v1279_v46 = vld [vmem:[%s1711_s1 + $0x108] sm:$0xff]   ;;  %v1269_v48 = vld [vmem:[%s1712_s0 + $0x84] ss:$20 sps:$4 sm:$0xff]   ;;  %v1272_v51 = vld [vmem:[%s1712_s0 + $0x80] ss:$20 sps:$4 sm:$0xff]   ;;  %886 = vst [vmem:[%s1713_s3] sm:$0x3] %v1307_v12 }
  0x12   :  { %1114 = vmatprep.subr.bf16.mxu1 %v1232_v17  ;;  %v1271_v50 = vld [vmem:[%s1712_s0 + $0x78] ss:$20 sps:$4 sm:$0xff]   ;;  %v1277_v54 = vld [vmem:[%s1712_s0 + $0xa0] ss:$20 sps:$4 sm:$0xff]   ;;  %v1278_v55 = vld [vmem:[%s1712_s0 + $0xa8] ss:$20 sps:$4 sm:$0xff]  }
  0x13   :  { %v1273_v52 = vld [vmem:[%s1712_s0 + $0xa4] ss:$20 sps:$4 sm:$0xff]   ;;  %v1275_v53 = vld [vmem:[%s1712_s0 + $0xac] ss:$20 sps:$4 sm:$0xff]   ;;  %v1282_v57 = vld [vmem:[%s1712_s0 + $0xd4] ss:$20 sps:$4 sm:$0xff]  }
  0x14   :  { %1051 = vmatpush3.bf16.msra.mxu0 %v1233_v18  ;;  %v1280_v56 = vld [vmem:[%s1712_s0 + $0xcc] ss:$20 sps:$4 sm:$0xff]   ;;  %v1284_v58 = vld [vmem:[%s1712_s0 + $0xc8] ss:$20 sps:$4 sm:$0xff]   ;;  %v1285_v59 = vld [vmem:[%s1712_s0 + $0xd0] ss:$20 sps:$4 sm:$0xff]  }
  0x15   :  { %1115 = vmatpush3.bf16.msra.mxu1 %v1234_v19  ;;  %1052 = vmatprep.subr.bf16.mxu0 %v1235_v20  ;;  %v1286_v60 = vld [vmem:[%s1712_s0 + $0xf4] ss:$20 sps:$4 sm:$0xff]   ;;  %v1288_v61 = vld [vmem:[%s1712_s0 + $0xfc] ss:$20 sps:$4 sm:$0xff]   ;;  %v1291_v63 = vld [vmem:[%s1712_s0 + $0xf8] ss:$20 sps:$4 sm:$0xff]  }
  0x16   :  { %1116 = vmatprep.subr.bf16.mxu1 %v1236_v21  ;;  %v1290_v62 = vld [vmem:[%s1712_s0 + $0xf0] ss:$20 sps:$4 sm:$0xff]   ;;  %v1297_v2 = vld [vmem:[%s1712_s0 + $0x118] ss:$20 sps:$4 sm:$0xff]   ;;  %v1298_v3 = vld [vmem:[%s1712_s0 + $0x120] ss:$20 sps:$4 sm:$0xff]  }
  0x17   :  { %v1293_v0 = vld [vmem:[%s1712_s0 + $0x11c] ss:$20 sps:$4 sm:$0xff]   ;;  %v1295_v1 = vld [vmem:[%s1712_s0 + $0x124] ss:$20 sps:$4 sm:$0xff]   ;;  %v1303_v8 = vld [vmem:[%s1712_s0 + $0x60] ss:$20 sps:$4 sm:$0xff]  }
  0x18   :  { %1053 = vmatpush3.bf16.msra.mxu0 %v1237_v22  ;;  %v1299_v4 = vld [vmem:[%s1712_s0 + $0x10] ss:$20 sps:$4 sm:$0xff]   ;;  %v1301_v6 = vld [vmem:[%s1712_s0 + $0x38] ss:$20 sps:$4 sm:$0xff]   ;;  %v1304_v9 = vld [vmem:[%s1712_s0 + $0x100] ss:$20 sps:$4 sm:$0xff]  }
  0x19   :  { %1117 = vmatpush3.bf16.msra.mxu1 %v1238_v23  ;;  %1054 = vmatprep.subr.bf16.mxu0 %v1239_v24  ;;  %v1300_v5 = vld [vmem:[%s1712_s0 + $0xb0] ss:$20 sps:$4 sm:$0xff]   ;;  %v1302_v7 = vld [vmem:[%s1712_s0 + $0xd8] ss:$20 sps:$4 sm:$0xff]   ;;  %v1305_v10 = vld [vmem:[%s1712_s0 + $0x88] ss:$20 sps:$4 sm:$0xff]  }
  0x1a   :  { %1118 = vmatprep.subr.bf16.mxu1 %v1240_v25  ;;  %v1306_v11 = vld [vmem:[%s1712_s0 + $0x128] ss:$20 sps:$4 sm:$0xff]  }
  0x1c   :  { %1055 = vmatpush3.bf16.msra.mxu0 %v1241_v26 }
  0x1d   :  { %1119 = vmatpush3.bf16.msra.mxu1 %v1242_v27  ;;  %1056 = vmatprep.subr.bf16.mxu0 %v1243_v28 }
  0x1e   :  { %1120 = vmatprep.subr.bf16.mxu1 %v1244_v29 }
  0x20   :  { %1057 = vmatpush3.bf16.msra.mxu0 %v1245_v30 }
  0x21   :  { %1121 = vmatpush3.bf16.msra.mxu1 %v1246_v31  ;;  %1182 = vmatprep.subr.bf16.mxu0 %v1253_v36 }
  0x22   :  { %1206 = vmatprep.subr.bf16.mxu1 %v1253_v36 }
  0x23   :  { %608 = vmatmul.mubr.bf16.vlgmr.msra.gmra.mxu0 %v1247_v32 }
  0x24   :  { %705 = vmatmul.mubr.bf16.vlgmr.msra.gmra.mxu1 %v1250_v34  ;;  %1183 = vmatpush3.bf16.msra.mxu0 %v1253_v36 }
  0x25   :  { %615 = vmatprep.mubr.bf16.mxu0 %v1254_v37  ;;  %712 = vmatprep.mubr.bf16.mxu1 %v1256_v38 }
  0x26   :  { %1210 = vmatpush3.bf16.msra.mxu1 %v1253_v36  ;;  %1184 = vmatprep.subr.bf16.mxu0 %v1266_v42 }
  0x27   :  { %1207 = vmatprep.subr.bf16.mxu1 %v1266_v42 }
  0x28   :  { %1185 = vmatpush3.bf16.msra.mxu0 %v1266_v42 }
  0x29   :  { %1186 = vmatprep.subr.bf16.mxu0 %v1279_v46 }
  0x2a   :  { %1211 = vmatpush3.bf16.msra.mxu1 %v1266_v42 }
  0x2b   :  { %616 = vmatmul.mubr.bf16.gmra.mxu0 %v1258_v39  ;;  %1208 = vmatprep.subr.bf16.mxu1 %v1279_v46 }
  0x2c   :  { %713 = vmatmul.mubr.bf16.gmra.mxu1 %v1259_v40  ;;  %623 = vmatprep.mubr.bf16.mxu0 %v1260_v41 }
  0x2d   :  { %720 = vmatprep.mubr.bf16.mxu1 %v1262_v43  ;;  %1187 = vmatpush3.bf16.msra.mxu0 %v1279_v46 }
  0x2e   :  { %1212 = vmatpush3.bf16.msra.mxu1 %v1279_v46  ;;  %1188 = vmatprep.subr.bf16.mxu0 %v1292_v49 }
  0x2f   :  { %1209 = vmatprep.subr.bf16.mxu1 %v1292_v49 }
  0x31   :  { %1189 = vmatpush3.bf16.msra.mxu0 %v1292_v49 }
  0x32   :  { %1213 = vmatpush3.bf16.msra.mxu1 %v1292_v49 }
  0x33   :  { %624 = vmatmul.mubr.bf16.gmra.mxu0 %v1264_v44 }
  0x34   :  { %721 = vmatmul.mubr.bf16.gmra.mxu1 %v1265_v45  ;;  %631 = vmatprep.mubr.bf16.mxu0 %v1267_v47 }
  0x35   :  { %728 = vmatprep.mubr.bf16.mxu1 %v1269_v48 }
  0x3b   :  { %632 = vmatmul.mubr.bf16.gmra.mxu0 %v1271_v50 }
  0x3c   :  { %729 = vmatmul.mubr.bf16.gmra.mxu1 %v1272_v51  ;;  %639 = vmatprep.mubr.bf16.mxu0 %v1273_v52 }
  0x3d   :  { %736 = vmatprep.mubr.bf16.mxu1 %v1275_v53 }
  0x43   :  { %640 = vmatmul.mubr.bf16.gmra.mxu0 %v1277_v54 }
  0x44   :  { %737 = vmatmul.mubr.bf16.gmra.mxu1 %v1278_v55  ;;  %647 = vmatprep.mubr.bf16.mxu0 %v1280_v56 }
  0x45   :  { %744 = vmatprep.mubr.bf16.mxu1 %v1282_v57 }
  0x4b   :  { %648 = vmatmul.mubr.bf16.gmra.mxu0 %v1284_v58 }
  0x4c   :  { %745 = vmatmul.mubr.bf16.gmra.mxu1 %v1285_v59  ;;  %655 = vmatprep.mubr.bf16.mxu0 %v1286_v60 }
  0x4d   :  { %752 = vmatprep.mubr.bf16.mxu1 %v1288_v61 }
  0x53   :  { %656 = vmatmul.mubr.bf16.gmra.mxu0 %v1290_v62 }
  0x54   :  { %753 = vmatmul.mubr.bf16.gmra.mxu1 %v1291_v63  ;;  %663 = vmatprep.mubr.bf16.mxu0 %v1293_v0 }
  0x55   :  { %760 = vmatprep.mubr.bf16.mxu1 %v1295_v1 }
  0x5b   :  { %664 = vmatmul.mubr.bf16.gmra.mxu0 %v1297_v2 }
  0x5c   :  { %761 = vmatmul.mubr.bf16.gmra.mxu1 %v1298_v3  ;;  %1190 = vmatprep.mubr.msk.bf16.mxu0 %vm550_vm0, %v1299_v4 }
  0x5d   :  { %1198 = vmatprep.mubr.msk.bf16.mxu1 %vm550_vm0, %v1300_v5 }
  0x63   :  { %1191 = vmatmul.mubr.msk.bf16.vlgmr.msra.gmra.mxu0 %vm550_vm0, %v1301_v6 }
  0x64   :  { %1199 = vmatmul.mubr.msk.bf16.vlgmr.msra.gmra.mxu1 %vm550_vm0, %v1302_v7  ;;  %1194 = vmatprep.mubr.msk.bf16.mxu0 %vm550_vm0, %v1303_v8 }
  0x65   :  { %1202 = vmatprep.mubr.msk.bf16.mxu1 %vm550_vm0, %v1304_v9 }
  0x6b   :  { %1195 = vmatmul.mubr.msk.bf16.gmra.mxu0 %vm550_vm0, %v1305_v10 }
  0x6c   :  { %1203 = vmatmul.mubr.msk.bf16.gmra.mxu1 %vm550_vm0, %v1306_v11 }
  0xe3   :  { %v1058_v13 = vpop.f32.mrf.mxu0 }
  0xe4   :  { %v1122_v14 = vpop.f32.mrf.mxu1 }
  0xe5   :  { %v1059_v15 = vpop.f32.mrf.mxu0 }
  0xe6   :  { %v1123_v16 = vpop.f32.mrf.mxu1  ;;  %v1060_v8 = vadd.f32 %v1059_v15, %v1058_v13 }
  0xe7   :  { %v1567_v17 = vpop.f32.mrf.mxu0  ;;  %v1124_v9 = vadd.f32 %v1123_v16, %v1122_v14 }
  0xe8   :  { %v1569_v18 = vpop.f32.mrf.mxu1 }
  0xe9   :  { %v1571_v19 = vpop.f32.mrf.mxu0  ;;  %v707_v15 = vadd.f32 %v1124_v9, %v1060_v8 }
  0xea   :  { %v1573_v20 = vpop.f32.mrf.mxu1 }
  0xeb   :  { %v1064_v21 = vpop.f32.mrf.mxu0 }
  0xec   :  { %v1128_v22 = vpop.f32.mrf.mxu1 }
  0xed   :  { %v1065_v23 = vpop.f32.mrf.mxu0 }
  0xee   :  { %v1129_v24 = vpop.f32.mrf.mxu1  ;;  %v1066_v10 = vadd.f32 %v1065_v23, %v1064_v21 }
  0xef   :  { %v1067_v25 = vpop.f32.mrf.mxu0  ;;  %v1130_v11 = vadd.f32 %v1129_v24, %v1128_v22 }
  0xf0   :  { %v1131_v26 = vpop.f32.mrf.mxu1 }
  0xf1   :  { %v1068_v27 = vpop.f32.mrf.mxu0  ;;  %v715_v14 = vadd.f32 %v1130_v11, %v1066_v10 }
  0xf2   :  { %v1132_v28 = vpop.f32.mrf.mxu1 }
  0xf3   :  { %v1575_v29 = vpop.f32.mrf.mxu0 }
  0xf4   :  { %v1577_v30 = vpop.f32.mrf.mxu1 }
  0xf5   :  { %v1579_v31 = vpop.f32.mrf.mxu0 }
  0xf6   :  { %v1581_v32 = vpop.f32.mrf.mxu1 }
  0xf7   :  { %v1583_v33 = vpop.f32.mrf.mxu0 }
  0xf8   :  { %1715 = vst [vmem:[#allocation2_spill] sm:$0xff] %v1583_v33  ;;  %v1585_v34 = vpop.f32.mrf.mxu1 }
  0xf9   :  { %1716 = vst [vmem:[#allocation3_spill] sm:$0xff] %v1585_v34  ;;  %v1587_v35 = vpop.f32.mrf.mxu0  ;;  %v1133_v34 = vadd.f32 %v1132_v28, %v1131_v26  ;;  %v1136_v26 = vadd.f32 %v1581_v32, %v1577_v30 }
  0xfa   :  { %1717 = vst [vmem:[#allocation4_spill] sm:$0xff] %v1587_v35  ;;  %v1589_v36 = vpop.f32.mrf.mxu1 }
  0xfb   :  { %1718 = vst [vmem:[#allocation5_spill] sm:$0xff] %v1589_v36  ;;  %v1076_v37 = vpop.f32.mrf.mxu0  ;;  %v1069_v36 = vadd.f32 %v1068_v27, %v1067_v25  ;;  %v1072_v25 = vadd.f32 %v1579_v31, %v1575_v29 }
  0xfc   :  { %v1591_v38 = vpop.f32.mrf.mxu1 }
  0xfd   :  { %v1077_v39 = vpop.f32.mrf.mxu0  ;;  %v718_v24 = vadd.f32 %v1133_v34, %v1069_v36 }
  0xfe   :  { %v1593_v40 = vpop.f32.mrf.mxu1  ;;  %v1078_v27 = vadd.f32 %v1077_v39, %v1076_v37 }
  0xff   :  { %v1595_v41 = vpop.f32.mrf.mxu0 }
 0x100   :  { %v1597_v42 = vpop.f32.mrf.mxu1 }
 0x101   :  { %v1599_v43 = vpop.f32.mrf.mxu0 }
 0x102   :  { %v1601_v44 = vpop.f32.mrf.mxu1  ;;  %v1081_v34 = vadd.f32 %v1599_v43, %v1595_v41  ;;  %v1728_v41 = vld [vmem:[#allocation4_spill] sm:$0xff] }
 0x103   :  { %1719 = vst [vmem:[#allocation6_spill] sm:$0xff] %v1601_v44  ;;  %v1082_v45 = vpop.f32.mrf.mxu0 }
 0x104   :  { %v1146_v46 = vpop.f32.mrf.mxu1 }
 0x105   :  { %v1083_v47 = vpop.f32.mrf.mxu0 }
 0x106   :  { %v1147_v48 = vpop.f32.mrf.mxu1  ;;  %v1084_v33 = vadd.f32 %v1083_v47, %v1082_v45  ;;  %v1142_v47 = vadd.f32 %v1593_v40, %v1591_v38  ;;  %v1727_v40 = vld [vmem:[#allocation2_spill] sm:$0xff] }
 0x107   :  { %v1085_v49 = vpop.f32.mrf.mxu0 }
 0x108   :  { %v1149_v50 = vpop.f32.mrf.mxu1 }
 0x109   :  { %v1086_v51 = vpop.f32.mrf.mxu0 }
 0x10a   :  { %v1150_v52 = vpop.f32.mrf.mxu1  ;;  %v1726_v29 = vld [vmem:[#allocation6_spill] sm:$0xff] }
 0x10b   :  { %v1088_v53 = vpop.f32.mrf.mxu0  ;;  %v1151_v45 = vadd.f32 %v1150_v52, %v1149_v50  ;;  %v1145_v31 = vadd.f32 %v1726_v29, %v1597_v42  ;;  %v1075_v42 = vadd.f32 %v1728_v41, %v1727_v40  ;;  %v723_v50 = vadd.f32 %v1136_v26, %v1072_v25 }
 0x10c   :  { %v1152_v54 = vpop.f32.mrf.mxu1 }
 0x10d   :  { %v1089_v55 = vpop.f32.mrf.mxu0 }
 0x10e   :  { %v1153_v56 = vpop.f32.mrf.mxu1 }
 0x10f   :  { %v1091_v57 = vpop.f32.mrf.mxu0 }
 0x110   :  { %v1155_v58 = vpop.f32.mrf.mxu1 }
 0x111   :  { %v1092_v59 = vpop.f32.mrf.mxu0 }
 0x112   :  { %v1156_v60 = vpop.f32.mrf.mxu1  ;;  %v1093_v16 = vadd.f32 %v1092_v59, %v1091_v57  ;;  %v1732_v59 = vld [vmem:[#allocation5_spill] sm:$0xff] }
 0x113   :  { %v1603_v61 = vpop.f32.mrf.mxu0  ;;  %v1157_v21 = vadd.f32 %v1156_v60, %v1155_v58  ;;  %v1731_v58 = vld [vmem:[#allocation3_spill] sm:$0xff] }
 0x114   :  { %1720 = vst [vmem:[#allocation7_spill] sm:$0xff] %v1603_v61  ;;  %v1605_v62 = vpop.f32.mrf.mxu1  ;;  %v1154_v61 = vadd.f32 %v1153_v56, %v1152_v54  ;;  %v1139_v60 = vadd.f32 %v1732_v59, %v1731_v58 }
 0x115   :  { %1721 = vst [vmem:[#allocation8_spill] sm:$0xff] %v1605_v62  ;;  %v1095_v63 = vpop.f32.mrf.mxu0  ;;  %v1090_v62 = vadd.f32 %v1089_v55, %v1088_v53  ;;  %v750_v39 = vadd.f32 %v1157_v21, %v1093_v16 }
 0x116   :  { %v1159_v0 = vpop.f32.mrf.mxu1 }
 0x117   :  { %v1607_v1 = vpop.f32.mrf.mxu0  ;;  %v747_v23 = vadd.f32 %v1154_v61, %v1090_v62 }
 0x118   :  { %1722 = vst [vmem:[#allocation9_spill] sm:$0xff] %v1607_v1  ;;  %v1609_v2 = vpop.f32.mrf.mxu1 }
 0x119   :  { %1723 = vst [vmem:[#allocation10_spill] sm:$0xff] %v1609_v2  ;;  %v1611_v3 = vpop.f32.mrf.mxu0  ;;  %v1148_v2 = vadd.f32 %v1147_v48, %v1146_v46 }
 0x11a   :  { %1724 = vst [vmem:[#allocation11_spill] sm:$0xff] %v1611_v3  ;;  %v1613_v4 = vpop.f32.mrf.mxu1  ;;  %v1127_v3 = vadd.f32 %v1573_v20, %v1569_v18 }
 0x11b   :  { %1725 = vst [vmem:[#allocation12_spill] sm:$0xff] %v1613_v4  ;;  %v1100_v5 = vpop.f32.mrf.mxu0  ;;  %v1063_v4 = vadd.f32 %v1571_v19, %v1567_v17  ;;  %v1087_v19 = vadd.f32 %v1086_v51, %v1085_v49  ;;  %v739_v46 = vadd.f32 %v1148_v2, %v1084_v33  ;;  %v1729_v51 = vld [vmem:[#allocation7_spill] sm:$0xff] }
 0x11c   :  { %v1164_v6 = vpop.f32.mrf.mxu1  ;;  %v1096_v52 = vadd.f32 %v1095_v63, %v1729_v51  ;;  %v1730_v53 = vld [vmem:[#allocation8_spill] sm:$0xff]  ;;  %v731_v63 = vadd.f32 %v1142_v47, %v1078_v27 }
 0x11d   :  { %v1101_v7 = vpop.f32.mrf.mxu0  ;;  %v710_v49 = vadd.f32 %v1127_v3, %v1063_v4  ;;  %v1160_v54 = vadd.f32 %v1159_v0, %v1730_v53  ;;  %v742_v57 = vadd.f32 %v1151_v45, %v1087_v19  ;;  %v734_v0 = vadd.f32 %v1145_v31, %v1081_v34 }
 0x11e   :  { %v1165_v12 = vpop.f32.mrf.mxu1  ;;  %v1102_v36 = vadd.f32 %v1101_v7, %v1100_v5  ;;  %v726_v45 = vadd.f32 %v1139_v60, %v1075_v42 }
 0x11f   :  { %v1103_v35 = vpop.f32.mrf.mxu0  ;;  %v1166_v37 = vadd.f32 %v1165_v12, %v1164_v6  ;;  %v1733_v12 = vld [vmem:[#allocation9_spill] sm:$0xff]  ;;  %v755_v21 = vadd.f32 %v1160_v54, %v1096_v52 }
 0x120   :  { %v1167_v1 = vpop.f32.mrf.mxu1 }
 0x121   :  { %v1104_v44 = vpop.f32.mrf.mxu0  ;;  %v763_v6 = vadd.f32 %v1166_v37, %v1102_v36 }
 0x122   :  { %v1168_v13 = vpop.f32.mrf.mxu1  ;;  %v1105_v2 = vadd.f32 %v1104_v44, %v1103_v35  ;;  %v1734_v35 = vld [vmem:[#allocation11_spill] sm:$0xff] }
 0x123   :  { %v1192_v22 = vpop.f32.mrf.mxu0  ;;  %v1169_v3 = vadd.f32 %v1168_v13, %v1167_v1  ;;  %v1099_v44 = vadd.f32 %v1734_v35, %v1733_v12  ;;  %v1735_v1 = vld [vmem:[#allocation10_spill] sm:$0xff]  ;;  %v1736_v13 = vld [vmem:[#allocation12_spill] sm:$0xff] }
 0x124   :  { %v812_v28 = vadd.f32 %v1192_v22, %v715_v14  ;;  %v1200_v17 = vpop.f32.mrf.mxu1  ;;  %v1163_v14 = vadd.f32 %v1736_v13, %v1735_v1 }
 0x125   :  { %v1623_v18 = vadd.f32 %v1200_v17, %v747_v23  ;;  %v803_v20 = vpop.f32.mrf.mxu0  ;;  %v766_v19 = vadd.f32 %v1169_v3, %v1105_v2 }
 0x126   :  { %868 = vst [vmem:[%s1714_s2 + $0x10] sm:$0xff] %v812_v28  ;;  %v804_v30 = vadd.f32 %v803_v20, %v707_v15  ;;  %v835_v32 = vpop.f32.mrf.mxu1  ;;  %v910_v22 = vmul.f32 %v812_v28, %v812_v28 }
 0x127   :  { %876 = vst [vmem:[%s1714_s2 + $0x50] sm:$0xff] %v1623_v18  ;;  %v1638_v33 = vadd.f32 %v835_v32, %v739_v46  ;;  %v1193_v38 = vpop.f32.mrf.mxu0 }
 0x128   :  { %866 = vst [vmem:[%s1714_s2] sm:$0xff] %v804_v30  ;;  %v815_v43 = vadd.f32 %v1193_v38, %v718_v24  ;;  %v1201_v48 = vpop.f32.mrf.mxu1  ;;  %v908_v7 = vmul.f32 %v804_v30, %v804_v30 }
 0x129   :  { %874 = vst [vmem:[%s1714_s2 + $0x40] sm:$0xff] %v1638_v33  ;;  %v1651_v55 = vadd.f32 %v1201_v48, %v750_v39  ;;  %v806_v56 = vpop.f32.mrf.mxu0  ;;  %v916_v54 = vmul.f32 %v1638_v33, %v1638_v33 }
 0x12a   :  { %869 = vst [vmem:[%s1714_s2 + $0x18] sm:$0xff] %v815_v43  ;;  %v807_v61 = vadd.f32 %v806_v56, %v710_v49  ;;  %v838_v62 = vpop.f32.mrf.mxu1  ;;  %v911_v20 = vmul.f32 %v815_v43, %v815_v43 }
 0x12b   :  { %877 = vst [vmem:[%s1714_s2 + $0x58] sm:$0xff] %v1651_v55  ;;  %v839_v4 = vadd.f32 %v838_v62, %v742_v57  ;;  %v1196_v5 = vpop.f32.mrf.mxu0 }
 0x12c   :  { %867 = vst [vmem:[%s1714_s2 + $0x8] sm:$0xff] %v807_v61  ;;  %v887_v8 = vadd.f32 %v807_v61, %v804_v30  ;;  %v909_v9 = vmul.f32 %v807_v61, %v807_v61  ;;  %v828_v10 = vadd.f32 %v1196_v5, %v731_v63  ;;  %v1204_v11 = vpop.f32.mrf.mxu1  ;;  %v758_v30 = vadd.f32 %v1163_v14, %v1099_v44 }
 0x12d   :  { %875 = vst [vmem:[%s1714_s2 + $0x48] sm:$0xff] %v839_v4  ;;  %v860_v15 = vadd.f32 %v1204_v11, %v763_v6  ;;  %v819_v16 = vpop.f32.mrf.mxu0  ;;  %v917_v58 = vmul.f32 %v839_v4, %v839_v4  ;;  %v918_v61 = vmul.f32 %v1623_v18, %v1623_v18 }
 0x12e   :  { %v888_v23 = vadd.f32 %v887_v8, %v812_v28  ;;  %v924_v24 = vadd.f32 %v909_v9, %v908_v7  ;;  %872 = vst [vmem:[%s1714_s2 + $0x30] sm:$0xff] %v828_v10  ;;  %v820_v25 = vadd.f32 %v819_v16, %v723_v50  ;;  %v851_v26 = vpop.f32.mrf.mxu1  ;;  %v914_v48 = vmul.f32 %v828_v10, %v828_v10 }
 0x12f   :  { %880 = vst [vmem:[%s1714_s2 + $0x70] sm:$0xff] %v860_v15  ;;  %v852_v27 = vadd.f32 %v851_v26, %v755_v21  ;;  %v1197_v17 = vpop.f32.mrf.mxu0 }
 0x130   :  { %v925_v46 = vadd.f32 %v924_v24, %v910_v22  ;;  %870 = vst [vmem:[%s1714_s2 + $0x20] sm:$0xff] %v820_v25  ;;  %v889_v28 = vadd.f32 %v888_v23, %v815_v43  ;;  %v831_v47 = vadd.f32 %v1197_v17, %v734_v0  ;;  %v1205_v34 = vpop.f32.mrf.mxu1  ;;  %v912_v36 = vmul.f32 %v820_v25, %v820_v25 }
 0x131   :  { %878 = vst [vmem:[%s1714_s2 + $0x60] sm:$0xff] %v852_v27  ;;  %v863_v29 = vadd.f32 %v1205_v34, %v766_v19  ;;  %v822_v31 = vpop.f32.mrf.mxu0  ;;  %v919_v0 = vmul.f32 %v1651_v55, %v1651_v55  ;;  %v920_v5 = vmul.f32 %v852_v27, %v852_v27 }
 0x132   :  { %v890_v32 = vadd.f32 %v889_v28, %v820_v25  ;;  %v926_v37 = vadd.f32 %v925_v46, %v911_v20  ;;  %873 = vst [vmem:[%s1714_s2 + $0x38] sm:$0xff] %v831_v47  ;;  %v823_v38 = vadd.f32 %v822_v31, %v726_v45  ;;  %v854_v39 = vpop.f32.mrf.mxu1  ;;  %v915_v51 = vmul.f32 %v831_v47, %v831_v47 }
 0x133   :  { %881 = vst [vmem:[%s1714_s2 + $0x78] sm:$0xff] %v863_v29  ;;  %v855_v40 = vadd.f32 %v854_v39, %v758_v30  ;;  %v923_v12 = vmul.f32 %v863_v29, %v863_v29 }
 0x134   :  { %v927_v41 = vadd.f32 %v926_v37, %v912_v36  ;;  %871 = vst [vmem:[%s1714_s2 + $0x28] sm:$0xff] %v823_v38  ;;  %v891_v42 = vadd.f32 %v890_v32, %v823_v38  ;;  %v913_v43 = vmul.f32 %v823_v38, %v823_v38 }
 0x135   :  { %879 = vst [vmem:[%s1714_s2 + $0x68] sm:$0xff] %v855_v40  ;;  %v921_v8 = vmul.f32 %v855_v40, %v855_v40 }
 0x136   :  { %v892_v49 = vadd.f32 %v891_v42, %v828_v10  ;;  %v928_v50 = vadd.f32 %v927_v41, %v913_v43  ;;  %v922_v10 = vmul.f32 %v860_v15, %v860_v15 }
 0x138   :  { %v893_v52 = vadd.f32 %v892_v49, %v831_v47  ;;  %v929_v53 = vadd.f32 %v928_v50, %v914_v48 }
 0x13a   :  { %v894_v56 = vadd.f32 %v893_v52, %v1638_v33  ;;  %v930_v57 = vadd.f32 %v929_v53, %v915_v51 }
 0x13c   :  { %v931_v59 = vadd.f32 %v930_v57, %v916_v54  ;;  %v895_v60 = vadd.f32 %v894_v56, %v839_v4 }
 0x13e   :  { %v896_v62 = vadd.f32 %v895_v60, %v1623_v18  ;;  %v932_v63 = vadd.f32 %v931_v59, %v917_v58 }
 0x140   :  { %v897_v2 = vadd.f32 %v896_v62, %v1651_v55  ;;  %v933_v3 = vadd.f32 %v932_v63, %v918_v61 }
 0x142   :  { %v898_v6 = vadd.f32 %v897_v2, %v852_v27  ;;  %v934_v7 = vadd.f32 %v933_v3, %v919_v0 }
 0x144   :  { %v899_v33 = vadd.f32 %v898_v6, %v855_v40  ;;  %v935_v9 = vadd.f32 %v934_v7, %v920_v5 }
 0x146   :  { %v900_v4 = vadd.f32 %v899_v33, %v860_v15  ;;  %v936_v11 = vadd.f32 %v935_v9, %v921_v8  ;;  %v945_v15 = vld [vmem:[%s1713_s3] sm:$0x3] }
 0x148   :  { %v901_v35 = vadd.f32 %v900_v4, %v863_v29  ;;  %v937_v44 = vadd.f32 %v936_v11, %v922_v10 }
 0x14a   :  { %v902_v18 = vrot.slane %v901_v35, 4  ;;  %v938_v1 = vadd.f32 %v937_v44, %v923_v12 }
 0x14c   :  { %v903_v13 = vadd.f32 %v902_v18, %v901_v35  ;;  %v939_v14 = vrot.slane %v938_v1, 4 }
 0x14e   :  { %v904_v16 = vrot.slane %v903_v13, 2  ;;  %v940_v21 = vadd.f32 %v939_v14, %v938_v1 }
 0x150   :  { %v905_v55 = vadd.f32 %v904_v16, %v903_v13  ;;  %v941_v22 = vrot.slane %v940_v21, 2 }
 0x152   :  { %v906_v23 = vrot.slane %v905_v55, 1  ;;  %v942_v24 = vadd.f32 %v941_v22, %v940_v21 }
 0x154   :  { %v943_v25 = vrot.slane %v942_v24, 1  ;;  %v907_v26 = vadd.f32 %v906_v23, %v905_v55 }
 0x156   :  { %v944_v27 = vadd.f32 %v943_v25, %v942_v24 }
 0x158   :  { %v947_v17 = vsel %vm946_vm1, %v907_v26, %v944_v27 }
 0x159   :  { %v948_v19 = vadd.f32 %v947_v17, %v945_v15 }
 0x15b   :  { %949 = vst [vmem:[%s1713_s3] sm:$0x3] %v948_v19 }

</bundles_post_ra>
